<compile_context>
chip_gen: v7x
topology: tpu7x:2x2x1
jax: 0.10.0
libtpu: 0.0.40
codegen_flags: <defaults>
</compile_context>

<pallas_src>
import functools

import numpy as np
import jax
import jax.numpy as jnp
from jax import lax
from jax.experimental import pallas as pl
from jax.experimental.pallas import tpu as pltpu

# Architecture constants fixed by the PyTorch module.
K1, S1, C1 = 8, 4, 32        # Conv2d(Cin, 32, kernel_size=8, stride=4)
K2, S2, C2 = 4, 2, 64        # Conv2d(32, 64, kernel_size=4, stride=2)
K3, S3, C3 = 3, 1, 64        # Conv2d(64, 64, kernel_size=3, stride=1)
FC_HIDDEN = 512


def _conv_out(n, k, s):
    return (n - k) // s + 1


# ---------------------------------------------------------------------------
# Fused kernel: conv1 -> conv2 -> conv3 -> fc1 -> fc2, one image per grid step.
# Activations are kept as (H, W*C) "row" matrices resident on-chip; each conv
# layer is k_h banded matmuls:
#   out[oh, ow*Cout+co] = relu(bias + sum_dh  x[s*oh+dh, :] @ band[dh])
# ---------------------------------------------------------------------------
def _dqn_fused_kernel(x_ref, w1_ref, b1_ref, w2_ref, b2_ref, w3_ref, b3_ref,
                      wf1_ref, bf1_ref, wf2_ref, bf2_ref, o_ref, *,
                      ho1, ho2, ho3):
    f32 = jnp.float32
    bf16 = jnp.bfloat16

    # (S1, H//S1, W*Cin): rows grouped by h % S1 so every conv1 tap dh maps to
    # one contiguous row slab (no strided loads, no patch matrix).
    x = x_ref[0]

    # ---- conv1: banded matmuls over stride-phase row slabs ----
    acc = jnp.zeros((ho1, w1_ref.shape[2]), f32)
    for dh in range(K1):
        a, r = dh // S1, dh % S1
        xs = x[r, a:a + ho1, :]                       # (ho1, W*Cin) bf16
        acc += jnp.dot(xs, w1_ref[dh], preferred_element_type=f32)
    a1 = jnp.maximum(acc + b1_ref[...], 0.0).astype(bf16)     # (ho1, Wo1*C1)

    # ---- conv2 ----
    acc = jnp.zeros((ho2, w2_ref.shape[2]), f32)
    for dh in range(K2):
        xs = jnp.concatenate(
            [a1[S2 * oh + dh:S2 * oh + dh + 1, :] for oh in range(ho2)], axis=0)
        acc += jnp.dot(xs, w2_ref[dh], preferred_element_type=f32)
    a2 = jnp.maximum(acc + b2_ref[...], 0.0).astype(bf16)     # (ho2, Wo2*C2)

    # ---- conv3 (stride 1 -> contiguous row slabs) ----
    acc = jnp.zeros((ho3, w3_ref.shape[2]), f32)
    for dh in range(K3):
        acc += jnp.dot(a2[dh:dh + ho3, :], w3_ref[dh], preferred_element_type=f32)
    a3 = jnp.maximum(acc + b3_ref[...], 0.0).astype(bf16)     # (ho3, Wo3*C3)

    # ---- fc1 (sum over conv3 output rows; hidden never leaves VMEM) ----
    acc = jnp.zeros((1, wf1_ref.shape[2]), f32)
    for h in range(ho3):
        acc += jnp.dot(a3[h:h + 1, :], wf1_ref[h], preferred_element_type=f32)
    hid = jnp.maximum(acc + bf1_ref[...], 0.0).astype(bf16)   # (1, 512)

    # ---- fc2: f32 Q-values ----
    o_ref[0] = jnp.dot(hid, wf2_ref[...], preferred_element_type=f32) + bf2_ref[...]


# ---------------------------------------------------------------------------
# Parameters: PyTorch-layout init + one-time conversion to banded kernel layout
# ---------------------------------------------------------------------------
def init_params(key, inp_size, no_actions):
    """Deterministic params in exactly the PyTorch module's layout."""
    C, H, W = inp_size
    h1, w1 = _conv_out(H, K1, S1), _conv_out(W, K1, S1)
    h2, w2 = _conv_out(h1, K2, S2), _conv_out(w1, K2, S2)
    h3, w3 = _conv_out(h2, K3, S3), _conv_out(w2, K3, S3)
    flat = C3 * h3 * w3

    ks = jax.random.split(key, 10)
    sd = 0.05
    return {
        "c1_w": jax.random.normal(ks[0], (C1, C, K1, K1), jnp.float32) * sd,
        "c1_b": jax.random.normal(ks[1], (C1,), jnp.float32) * sd,
        "c2_w": jax.random.normal(ks[2], (C2, C1, K2, K2), jnp.float32) * sd,
        "c2_b": jax.random.normal(ks[3], (C2,), jnp.float32) * sd,
        "c3_w": jax.random.normal(ks[4], (C3, C2, K3, K3), jnp.float32) * sd,
        "c3_b": jax.random.normal(ks[5], (C3,), jnp.float32) * sd,
        # nn.Linear stores (out_features, in_features)
        "fc1_w": jax.random.normal(ks[6], (FC_HIDDEN, flat), jnp.float32) * sd,
        "fc1_b": jax.random.normal(ks[7], (FC_HIDDEN,), jnp.float32) * sd,
        "fc2_w": jax.random.normal(ks[8], (no_actions, FC_HIDDEN), jnp.float32) * sd,
        "fc2_b": jax.random.normal(ks[9], (no_actions,), jnp.float32) * sd,
    }


def _band_conv_weight(w_oihw, stride, w_in, w_out, scale=1.0):
    """(Cout,Cin,kh,kw) torch conv weight -> (kh, w_in*Cin, w_out*Cout) banded
    matrices so that, with activation rows a[h, w*Cin+ci] = act[ci, h, w]:
      out[oh, ow*Cout+co] = sum_dh  a[stride*oh+dh, :] @ band[dh]."""
    w = np.asarray(w_oihw, np.float32) * scale
    cout, cin, kh, kw = w.shape
    band = np.zeros((kh, w_in * cin, w_out * cout), np.float32)
    for dh in range(kh):
        for ow in range(w_out):
            for dw in range(kw):
                wi = stride * ow + dw
                band[dh, wi * cin:(wi + 1) * cin, ow * cout:(ow + 1) * cout] = \
                    w[:, :, dh, dw].T
    return jnp.asarray(band, jnp.bfloat16)


def _band_bias(b, w_out):
    return jnp.asarray(np.tile(np.asarray(b, np.float32), w_out)[None, :])


def prep_params(params, inp_size):
    """One-time conversion: banded bf16 conv weights (x/255 folded into conv1),
    row-layout-permuted fc1 weights, f32 bias rows.  No 128-lane channel pad."""
    C, H, W = inp_size
    ho1, wo1 = _conv_out(H, K1, S1), _conv_out(W, K1, S1)
    ho2, wo2 = _conv_out(ho1, K2, S2), _conv_out(wo1, K2, S2)
    ho3, wo3 = _conv_out(ho2, K3, S3), _conv_out(wo2, K3, S3)

    p = {}
    p["w1"] = _band_conv_weight(params["c1_w"], S1, W, wo1, scale=1.0 / 255.0)
    p["b1"] = _band_bias(params["c1_b"], wo1)
    p["w2"] = _band_conv_weight(params["c2_w"], S2, wo1, wo2)
    p["b2"] = _band_bias(params["c2_b"], wo2)
    p["w3"] = _band_conv_weight(params["c3_w"], S3, wo2, wo3)
    p["b3"] = _band_bias(params["c3_b"], wo3)
    # fc1: PyTorch flattens conv output as (C, H, W); our rows are a3[h, w*C3+c],
    # so permute the input-feature axis once: wf1[h, w*C3+c, o] = fc1_w[o, c,h,w].
    fw = np.asarray(params["fc1_w"], np.float32).reshape(FC_HIDDEN, C3, ho3, wo3)
    fw = fw.transpose(2, 3, 1, 0).reshape(ho3, wo3 * C3, FC_HIDDEN)
    p["wf1"] = jnp.asarray(fw, jnp.bfloat16)
    p["bf1"] = jnp.asarray(np.asarray(params["fc1_b"], np.float32)[None, :])
    p["wf2"] = jnp.asarray(np.asarray(params["fc2_w"], np.float32).T, jnp.bfloat16)
    p["bf2"] = jnp.asarray(np.asarray(params["fc2_b"], np.float32)[None, :])
    return p


# ---------------------------------------------------------------------------
# Forward pass (mirrors NN.forward: x/255 -> conv stack -> flatten -> fc stack)
# ---------------------------------------------------------------------------
def nn_forward(prepped, x_nchw):
    B, C, H, W = x_nchw.shape
    ho1, wo1 = _conv_out(H, K1, S1), _conv_out(W, K1, S1)
    ho2, wo2 = _conv_out(ho1, K2, S2), _conv_out(wo1, K2, S2)
    ho3, wo3 = _conv_out(ho2, K3, S3), _conv_out(wo2, K3, S3)
    n_act = prepped["bf2"].shape[1]
    assert H % S1 == 0 and ho3 >= 1
    assert prepped["w1"].shape == (K1, W * C, wo1 * C1)

    # TODO(synk): this NCHW -> stride-phase-major relayout + bf16 cast is the
    # single remaining XLA op outside the fused kernel (x/255 is folded into
    # the conv1 band weights, so no separate scaling op).
    x4 = x_nchw.reshape(B, C, H // S1, S1, W)          # (B, c, q, r, w)
    x4 = jnp.transpose(x4, (0, 3, 2, 4, 1))            # (B, r, q, w, c)
    x4 = x4.reshape(B, S1, H // S1, W * C).astype(jnp.bfloat16)

    flops = 2 * B * (K1 * ho1 * (W * C) * (wo1 * C1)
                     + K2 * ho2 * (wo1 * C1) * (wo2 * C2)
                     + K3 * ho3 * (wo2 * C2) * (wo3 * C3)
                     + ho3 * (wo3 * C3) * FC_HIDDEN
                     + FC_HIDDEN * n_act)
    w_bytes = sum(int(v.size) * v.dtype.itemsize for v in prepped.values())
    bytes_accessed = int(x4.size) * 2 + B * n_act * 4 + w_bytes

    out = pl.pallas_call(
        functools.partial(_dqn_fused_kernel, ho1=ho1, ho2=ho2, ho3=ho3),
        out_shape=jax.ShapeDtypeStruct((B, 1, n_act), jnp.float32),
        grid_spec=pltpu.PrefetchScalarGridSpec(
            num_scalar_prefetch=0,
            grid=(B,),
            in_specs=[
                pl.BlockSpec((1, S1, H // S1, W * C), lambda b: (b, 0, 0, 0)),
                pl.BlockSpec(prepped["w1"].shape, lambda b: (0, 0, 0)),
                pl.BlockSpec(prepped["b1"].shape, lambda b: (0, 0)),
                pl.BlockSpec(prepped["w2"].shape, lambda b: (0, 0, 0)),
                pl.BlockSpec(prepped["b2"].shape, lambda b: (0, 0)),
                pl.BlockSpec(prepped["w3"].shape, lambda b: (0, 0, 0)),
                pl.BlockSpec(prepped["b3"].shape, lambda b: (0, 0)),
                pl.BlockSpec(prepped["wf1"].shape, lambda b: (0, 0, 0)),
                pl.BlockSpec(prepped["bf1"].shape, lambda b: (0, 0)),
                pl.BlockSpec(prepped["wf2"].shape, lambda b: (0, 0)),
                pl.BlockSpec(prepped["bf2"].shape, lambda b: (0, 0)),
            ],
            out_specs=pl.BlockSpec((1, 1, n_act), lambda b: (b, 0, 0)),
        ),
        compiler_params=pltpu.CompilerParams(
            dimension_semantics=("parallel",)),
        cost_estimate=pl.CostEstimate(flops=flops, transcendentals=0,
                                      bytes_accessed=bytes_accessed),
    )(x4, prepped["w1"], prepped["b1"], prepped["w2"], prepped["b2"],
      prepped["w3"], prepped["b3"], prepped["wf1"], prepped["bf1"],
      prepped["wf2"], prepped["bf2"])
    return out.reshape(B, n_act)       # f32 Q-values


# ---------------------------------------------------------------------------
# Pure-JAX f32 reference of the PyTorch module (for correctness check only)
# ---------------------------------------------------------------------------
def _reference_forward(params, x_nchw):
    x = x_nchw.astype(jnp.float32) / 255.0

    def conv(h, w, b, s):
        y = lax.conv_general_dilated(h, w, window_strides=(s, s),
                                     padding="VALID",
                                     dimension_numbers=("NCHW", "OIHW", "NCHW"))
        return jax.nn.relu(y + b.reshape(1, -1, 1, 1))

    h = conv(x, params["c1_w"], params["c1_b"], S1)
    h = conv(h, params["c2_w"], params["c2_b"], S2)
    h = conv(h, params["c3_w"], params["c3_b"], S3)
    h = h.reshape(h.shape[0], -1)                        # NCHW flatten (PyTorch)
    h = jax.nn.relu(h @ params["fc1_w"].T + params["fc1_b"])
    return h @ params["fc2_w"].T + params["fc2_b"]


if __name__ == "__main__":
    # Small shapes consistent with the module: 4 stacked frames, 36x36 spatial
    # (36 -> conv8/4 -> 8 -> conv4/2 -> 3 -> conv3/1 -> 1), batch=2, 6 actions.
    key = jax.random.PRNGKey(0)
    k_param, k_x = jax.random.split(key)

    inp_size = (4, 36, 36)
    no_actions = 6
    batch = 2

    params = init_params(k_param, inp_size, no_actions)
    prepped = prep_params(params, inp_size)

    x = jax.random.uniform(k_x, (batch,) + inp_size, jnp.float32,
                           minval=0.0, maxval=255.0)

    fwd = jax.jit(nn_forward)
    q_values = fwd(prepped, x)
    jax.block_until_ready(q_values)
    assert q_values.shape == (batch, no_actions)

    q_ref = _reference_forward(params, x)
    np.testing.assert_allclose(np.asarray(q_values), np.asarray(q_ref),
                               rtol=5e-2, atol=5e-2)
    print("KERNEL_OK")
</pallas_src>

<mosaic_0001>
module attributes {stable_mosaic.version = 11 : i64} {
  func.func @_dqn_fused_kernel(%arg0: i32, %arg1: memref<1x4x9x144xbf16, #tpu.memory_space<vmem>>, %arg2: memref<8x144x256xbf16, #tpu.memory_space<vmem>>, %arg3: memref<1x256xf32, #tpu.memory_space<vmem>>, %arg4: memref<4x256x192xbf16, #tpu.memory_space<vmem>>, %arg5: memref<1x192xf32, #tpu.memory_space<vmem>>, %arg6: memref<3x192x64xbf16, #tpu.memory_space<vmem>>, %arg7: memref<1x64xf32, #tpu.memory_space<vmem>>, %arg8: memref<1x64x512xbf16, #tpu.memory_space<vmem>>, %arg9: memref<1x512xf32, #tpu.memory_space<vmem>>, %arg10: memref<512x6xbf16, #tpu.memory_space<vmem>>, %arg11: memref<1x6xf32, #tpu.memory_space<vmem>>, %arg12: memref<1x1x6xf32, #tpu.memory_space<vmem>>) attributes {dimension_semantics = [#tpu.dimension_semantics<parallel>], iteration_bounds = array<i64: 2>, scalar_prefetch = 0 : i64, scratch_operands = 0 : i64, tpu.core_type = #tpu.core_type<tc>, window_params = [{transform_indices = @transform_0, window_bounds = array<i64: 1, 4, 9, 144>}, {pipeline_mode = #tpu.pipeline_mode<synchronous>, transform_indices = @transform_1, window_bounds = array<i64: 8, 144, 256>}, {pipeline_mode = #tpu.pipeline_mode<synchronous>, transform_indices = @transform_2, window_bounds = array<i64: 1, 256>}, {pipeline_mode = #tpu.pipeline_mode<synchronous>, transform_indices = @transform_3, window_bounds = array<i64: 4, 256, 192>}, {pipeline_mode = #tpu.pipeline_mode<synchronous>, transform_indices = @transform_4, window_bounds = array<i64: 1, 192>}, {pipeline_mode = #tpu.pipeline_mode<synchronous>, transform_indices = @transform_5, window_bounds = array<i64: 3, 192, 64>}, {pipeline_mode = #tpu.pipeline_mode<synchronous>, transform_indices = @transform_6, window_bounds = array<i64: 1, 64>}, {pipeline_mode = #tpu.pipeline_mode<synchronous>, transform_indices = @transform_7, window_bounds = array<i64: 1, 64, 512>}, {pipeline_mode = #tpu.pipeline_mode<synchronous>, transform_indices = @transform_8, window_bounds = array<i64: 1, 512>}, {pipeline_mode = #tpu.pipeline_mode<synchronous>, transform_indices = @transform_9, window_bounds = array<i64: 512, 6>}, {pipeline_mode = #tpu.pipeline_mode<synchronous>, transform_indices = @transform_10, window_bounds = array<i64: 1, 6>}, {transform_indices = @transform_11, window_bounds = array<i64: 1, 1, 6>}]} {
    %c0 = arith.constant 0 : index
    %c0_0 = arith.constant 0 : index
    %c0_1 = arith.constant 0 : index
    %c0_2 = arith.constant 0 : index
    %0 = vector.load %arg1[%c0, %c0_0, %c0_1, %c0_2] : memref<1x4x9x144xbf16, #tpu.memory_space<vmem>>, vector<1x4x9x144xbf16>
    %1 = vector.shape_cast %0 : vector<1x4x9x144xbf16> to vector<4x9x144xbf16>
    %cst = arith.constant 0.000000e+00 : f32
    %2 = vector.broadcast %cst : f32 to vector<8x256xf32>
    %3 = vector.extract_strided_slice %1 {offsets = [0, 0, 0], sizes = [1, 8, 144], strides = [1, 1, 1]} : vector<4x9x144xbf16> to vector<1x8x144xbf16>
    %4 = vector.shape_cast %3 : vector<1x8x144xbf16> to vector<8x144xbf16>
    %c0_3 = arith.constant 0 : index
    %c0_4 = arith.constant 0 : index
    %c0_5 = arith.constant 0 : index
    %5 = vector.load %arg2[%c0_3, %c0_4, %c0_5] : memref<8x144x256xbf16, #tpu.memory_space<vmem>>, vector<1x144x256xbf16>
    %6 = vector.shape_cast %5 : vector<1x144x256xbf16> to vector<144x256xbf16>
    %cst_6 = arith.constant dense<0.000000e+00> : vector<8x256xf32>
    %7 = tpu.matmul %4, %6, %cst_6 {dimension_numbers = #tpu.dot_dimension_numbers<[1], [0], [0], [1], [0, 0, 1, 1], [], []>} : vector<8x144xbf16>, vector<144x256xbf16>, vector<8x256xf32> -> vector<8x256xf32>
    %8 = arith.addf %2, %7 : vector<8x256xf32>
    %9 = vector.extract_strided_slice %1 {offsets = [1, 0, 0], sizes = [1, 8, 144], strides = [1, 1, 1]} : vector<4x9x144xbf16> to vector<1x8x144xbf16>
    %10 = vector.shape_cast %9 : vector<1x8x144xbf16> to vector<8x144xbf16>
    %c1 = arith.constant 1 : index
    %c0_7 = arith.constant 0 : index
    %c0_8 = arith.constant 0 : index
    %11 = vector.load %arg2[%c1, %c0_7, %c0_8] : memref<8x144x256xbf16, #tpu.memory_space<vmem>>, vector<1x144x256xbf16>
    %12 = vector.shape_cast %11 : vector<1x144x256xbf16> to vector<144x256xbf16>
    %cst_9 = arith.constant dense<0.000000e+00> : vector<8x256xf32>
    %13 = tpu.matmul %10, %12, %cst_9 {dimension_numbers = #tpu.dot_dimension_numbers<[1], [0], [0], [1], [0, 0, 1, 1], [], []>} : vector<8x144xbf16>, vector<144x256xbf16>, vector<8x256xf32> -> vector<8x256xf32>
    %14 = arith.addf %8, %13 : vector<8x256xf32>
    %15 = vector.extract_strided_slice %1 {offsets = [2, 0, 0], sizes = [1, 8, 144], strides = [1, 1, 1]} : vector<4x9x144xbf16> to vector<1x8x144xbf16>
    %16 = vector.shape_cast %15 : vector<1x8x144xbf16> to vector<8x144xbf16>
    %c2 = arith.constant 2 : index
    %c0_10 = arith.constant 0 : index
    %c0_11 = arith.constant 0 : index
    %17 = vector.load %arg2[%c2, %c0_10, %c0_11] : memref<8x144x256xbf16, #tpu.memory_space<vmem>>, vector<1x144x256xbf16>
    %18 = vector.shape_cast %17 : vector<1x144x256xbf16> to vector<144x256xbf16>
    %cst_12 = arith.constant dense<0.000000e+00> : vector<8x256xf32>
    %19 = tpu.matmul %16, %18, %cst_12 {dimension_numbers = #tpu.dot_dimension_numbers<[1], [0], [0], [1], [0, 0, 1, 1], [], []>} : vector<8x144xbf16>, vector<144x256xbf16>, vector<8x256xf32> -> vector<8x256xf32>
    %20 = arith.addf %14, %19 : vector<8x256xf32>
    %21 = vector.extract_strided_slice %1 {offsets = [3, 0, 0], sizes = [1, 8, 144], strides = [1, 1, 1]} : vector<4x9x144xbf16> to vector<1x8x144xbf16>
    %22 = vector.shape_cast %21 : vector<1x8x144xbf16> to vector<8x144xbf16>
    %c3 = arith.constant 3 : index
    %c0_13 = arith.constant 0 : index
    %c0_14 = arith.constant 0 : index
    %23 = vector.load %arg2[%c3, %c0_13, %c0_14] : memref<8x144x256xbf16, #tpu.memory_space<vmem>>, vector<1x144x256xbf16>
    %24 = vector.shape_cast %23 : vector<1x144x256xbf16> to vector<144x256xbf16>
    %cst_15 = arith.constant dense<0.000000e+00> : vector<8x256xf32>
    %25 = tpu.matmul %22, %24, %cst_15 {dimension_numbers = #tpu.dot_dimension_numbers<[1], [0], [0], [1], [0, 0, 1, 1], [], []>} : vector<8x144xbf16>, vector<144x256xbf16>, vector<8x256xf32> -> vector<8x256xf32>
    %26 = arith.addf %20, %25 : vector<8x256xf32>
    %27 = vector.extract_strided_slice %1 {offsets = [0, 1, 0], sizes = [1, 8, 144], strides = [1, 1, 1]} : vector<4x9x144xbf16> to vector<1x8x144xbf16>
    %28 = vector.shape_cast %27 : vector<1x8x144xbf16> to vector<8x144xbf16>
    %c4 = arith.constant 4 : index
    %c0_16 = arith.constant 0 : index
    %c0_17 = arith.constant 0 : index
    %29 = vector.load %arg2[%c4, %c0_16, %c0_17] : memref<8x144x256xbf16, #tpu.memory_space<vmem>>, vector<1x144x256xbf16>
    %30 = vector.shape_cast %29 : vector<1x144x256xbf16> to vector<144x256xbf16>
    %cst_18 = arith.constant dense<0.000000e+00> : vector<8x256xf32>
    %31 = tpu.matmul %28, %30, %cst_18 {dimension_numbers = #tpu.dot_dimension_numbers<[1], [0], [0], [1], [0, 0, 1, 1], [], []>} : vector<8x144xbf16>, vector<144x256xbf16>, vector<8x256xf32> -> vector<8x256xf32>
    %32 = arith.addf %26, %31 : vector<8x256xf32>
    %33 = vector.extract_strided_slice %1 {offsets = [1, 1, 0], sizes = [1, 8, 144], strides = [1, 1, 1]} : vector<4x9x144xbf16> to vector<1x8x144xbf16>
    %34 = vector.shape_cast %33 : vector<1x8x144xbf16> to vector<8x144xbf16>
    %c5 = arith.constant 5 : index
    %c0_19 = arith.constant 0 : index
    %c0_20 = arith.constant 0 : index
    %35 = vector.load %arg2[%c5, %c0_19, %c0_20] : memref<8x144x256xbf16, #tpu.memory_space<vmem>>, vector<1x144x256xbf16>
    %36 = vector.shape_cast %35 : vector<1x144x256xbf16> to vector<144x256xbf16>
    %cst_21 = arith.constant dense<0.000000e+00> : vector<8x256xf32>
    %37 = tpu.matmul %34, %36, %cst_21 {dimension_numbers = #tpu.dot_dimension_numbers<[1], [0], [0], [1], [0, 0, 1, 1], [], []>} : vector<8x144xbf16>, vector<144x256xbf16>, vector<8x256xf32> -> vector<8x256xf32>
    %38 = arith.addf %32, %37 : vector<8x256xf32>
    %39 = vector.extract_strided_slice %1 {offsets = [2, 1, 0], sizes = [1, 8, 144], strides = [1, 1, 1]} : vector<4x9x144xbf16> to vector<1x8x144xbf16>
    %40 = vector.shape_cast %39 : vector<1x8x144xbf16> to vector<8x144xbf16>
    %c6 = arith.constant 6 : index
    %c0_22 = arith.constant 0 : index
    %c0_23 = arith.constant 0 : index
    %41 = vector.load %arg2[%c6, %c0_22, %c0_23] : memref<8x144x256xbf16, #tpu.memory_space<vmem>>, vector<1x144x256xbf16>
    %42 = vector.shape_cast %41 : vector<1x144x256xbf16> to vector<144x256xbf16>
    %cst_24 = arith.constant dense<0.000000e+00> : vector<8x256xf32>
    %43 = tpu.matmul %40, %42, %cst_24 {dimension_numbers = #tpu.dot_dimension_numbers<[1], [0], [0], [1], [0, 0, 1, 1], [], []>} : vector<8x144xbf16>, vector<144x256xbf16>, vector<8x256xf32> -> vector<8x256xf32>
    %44 = arith.addf %38, %43 : vector<8x256xf32>
    %45 = vector.extract_strided_slice %1 {offsets = [3, 1, 0], sizes = [1, 8, 144], strides = [1, 1, 1]} : vector<4x9x144xbf16> to vector<1x8x144xbf16>
    %46 = vector.shape_cast %45 : vector<1x8x144xbf16> to vector<8x144xbf16>
    %c7 = arith.constant 7 : index
    %c0_25 = arith.constant 0 : index
    %c0_26 = arith.constant 0 : index
    %47 = vector.load %arg2[%c7, %c0_25, %c0_26] : memref<8x144x256xbf16, #tpu.memory_space<vmem>>, vector<1x144x256xbf16>
    %48 = vector.shape_cast %47 : vector<1x144x256xbf16> to vector<144x256xbf16>
    %cst_27 = arith.constant dense<0.000000e+00> : vector<8x256xf32>
    %49 = tpu.matmul %46, %48, %cst_27 {dimension_numbers = #tpu.dot_dimension_numbers<[1], [0], [0], [1], [0, 0, 1, 1], [], []>} : vector<8x144xbf16>, vector<144x256xbf16>, vector<8x256xf32> -> vector<8x256xf32>
    %50 = arith.addf %44, %49 : vector<8x256xf32>
    %c0_28 = arith.constant 0 : index
    %c0_29 = arith.constant 0 : index
    %51 = vector.load %arg3[%c0_28, %c0_29] : memref<1x256xf32, #tpu.memory_space<vmem>>, vector<1x256xf32>
    %52 = vector.broadcast %51 : vector<1x256xf32> to vector<8x256xf32>
    %53 = arith.addf %50, %52 : vector<8x256xf32>
    %cst_30 = arith.constant 0.000000e+00 : f32
    %54 = vector.broadcast %cst_30 : f32 to vector<8x256xf32>
    %55 = arith.maximumf %53, %54 : vector<8x256xf32>
    %56 = arith.truncf %55 : vector<8x256xf32> to vector<8x256xbf16>
    %cst_31 = arith.constant 0.000000e+00 : f32
    %57 = vector.broadcast %cst_31 : f32 to vector<3x192xf32>
    %58 = vector.extract_strided_slice %56 {offsets = [0, 0], sizes = [1, 256], strides = [1, 1]} : vector<8x256xbf16> to vector<1x256xbf16>
    %59 = vector.extract_strided_slice %56 {offsets = [2, 0], sizes = [1, 256], strides = [1, 1]} : vector<8x256xbf16> to vector<1x256xbf16>
    %60 = vector.extract_strided_slice %56 {offsets = [4, 0], sizes = [1, 256], strides = [1, 1]} : vector<8x256xbf16> to vector<1x256xbf16>
    %61 = tpu.concatenate %58, %59, %60 in 0 : vector<1x256xbf16>, vector<1x256xbf16>, vector<1x256xbf16> -> vector<3x256xbf16>
    %c0_32 = arith.constant 0 : index
    %c0_33 = arith.constant 0 : index
    %c0_34 = arith.constant 0 : index
    %62 = vector.load %arg4[%c0_32, %c0_33, %c0_34] : memref<4x256x192xbf16, #tpu.memory_space<vmem>>, vector<1x256x192xbf16>
    %63 = vector.shape_cast %62 : vector<1x256x192xbf16> to vector<256x192xbf16>
    %cst_35 = arith.constant dense<0.000000e+00> : vector<3x192xf32>
    %64 = tpu.matmul %61, %63, %cst_35 {dimension_numbers = #tpu.dot_dimension_numbers<[1], [0], [0], [1], [0, 0, 1, 1], [], []>} : vector<3x256xbf16>, vector<256x192xbf16>, vector<3x192xf32> -> vector<3x192xf32>
    %65 = arith.addf %57, %64 : vector<3x192xf32>
    %66 = vector.extract_strided_slice %56 {offsets = [1, 0], sizes = [1, 256], strides = [1, 1]} : vector<8x256xbf16> to vector<1x256xbf16>
    %67 = vector.extract_strided_slice %56 {offsets = [3, 0], sizes = [1, 256], strides = [1, 1]} : vector<8x256xbf16> to vector<1x256xbf16>
    %68 = vector.extract_strided_slice %56 {offsets = [5, 0], sizes = [1, 256], strides = [1, 1]} : vector<8x256xbf16> to vector<1x256xbf16>
    %69 = tpu.concatenate %66, %67, %68 in 0 : vector<1x256xbf16>, vector<1x256xbf16>, vector<1x256xbf16> -> vector<3x256xbf16>
    %c1_36 = arith.constant 1 : index
    %c0_37 = arith.constant 0 : index
    %c0_38 = arith.constant 0 : index
    %70 = vector.load %arg4[%c1_36, %c0_37, %c0_38] : memref<4x256x192xbf16, #tpu.memory_space<vmem>>, vector<1x256x192xbf16>
    %71 = vector.shape_cast %70 : vector<1x256x192xbf16> to vector<256x192xbf16>
    %cst_39 = arith.constant dense<0.000000e+00> : vector<3x192xf32>
    %72 = tpu.matmul %69, %71, %cst_39 {dimension_numbers = #tpu.dot_dimension_numbers<[1], [0], [0], [1], [0, 0, 1, 1], [], []>} : vector<3x256xbf16>, vector<256x192xbf16>, vector<3x192xf32> -> vector<3x192xf32>
    %73 = arith.addf %65, %72 : vector<3x192xf32>
    %74 = vector.extract_strided_slice %56 {offsets = [2, 0], sizes = [1, 256], strides = [1, 1]} : vector<8x256xbf16> to vector<1x256xbf16>
    %75 = vector.extract_strided_slice %56 {offsets = [4, 0], sizes = [1, 256], strides = [1, 1]} : vector<8x256xbf16> to vector<1x256xbf16>
    %76 = vector.extract_strided_slice %56 {offsets = [6, 0], sizes = [1, 256], strides = [1, 1]} : vector<8x256xbf16> to vector<1x256xbf16>
    %77 = tpu.concatenate %74, %75, %76 in 0 : vector<1x256xbf16>, vector<1x256xbf16>, vector<1x256xbf16> -> vector<3x256xbf16>
    %c2_40 = arith.constant 2 : index
    %c0_41 = arith.constant 0 : index
    %c0_42 = arith.constant 0 : index
    %78 = vector.load %arg4[%c2_40, %c0_41, %c0_42] : memref<4x256x192xbf16, #tpu.memory_space<vmem>>, vector<1x256x192xbf16>
    %79 = vector.shape_cast %78 : vector<1x256x192xbf16> to vector<256x192xbf16>
    %cst_43 = arith.constant dense<0.000000e+00> : vector<3x192xf32>
    %80 = tpu.matmul %77, %79, %cst_43 {dimension_numbers = #tpu.dot_dimension_numbers<[1], [0], [0], [1], [0, 0, 1, 1], [], []>} : vector<3x256xbf16>, vector<256x192xbf16>, vector<3x192xf32> -> vector<3x192xf32>
    %81 = arith.addf %73, %80 : vector<3x192xf32>
    %82 = vector.extract_strided_slice %56 {offsets = [3, 0], sizes = [1, 256], strides = [1, 1]} : vector<8x256xbf16> to vector<1x256xbf16>
    %83 = vector.extract_strided_slice %56 {offsets = [5, 0], sizes = [1, 256], strides = [1, 1]} : vector<8x256xbf16> to vector<1x256xbf16>
    %84 = vector.extract_strided_slice %56 {offsets = [7, 0], sizes = [1, 256], strides = [1, 1]} : vector<8x256xbf16> to vector<1x256xbf16>
    %85 = tpu.concatenate %82, %83, %84 in 0 : vector<1x256xbf16>, vector<1x256xbf16>, vector<1x256xbf16> -> vector<3x256xbf16>
    %c3_44 = arith.constant 3 : index
    %c0_45 = arith.constant 0 : index
    %c0_46 = arith.constant 0 : index
    %86 = vector.load %arg4[%c3_44, %c0_45, %c0_46] : memref<4x256x192xbf16, #tpu.memory_space<vmem>>, vector<1x256x192xbf16>
    %87 = vector.shape_cast %86 : vector<1x256x192xbf16> to vector<256x192xbf16>
    %cst_47 = arith.constant dense<0.000000e+00> : vector<3x192xf32>
    %88 = tpu.matmul %85, %87, %cst_47 {dimension_numbers = #tpu.dot_dimension_numbers<[1], [0], [0], [1], [0, 0, 1, 1], [], []>} : vector<3x256xbf16>, vector<256x192xbf16>, vector<3x192xf32> -> vector<3x192xf32>
    %89 = arith.addf %81, %88 : vector<3x192xf32>
    %c0_48 = arith.constant 0 : index
    %c0_49 = arith.constant 0 : index
    %90 = vector.load %arg5[%c0_48, %c0_49] : memref<1x192xf32, #tpu.memory_space<vmem>>, vector<1x192xf32>
    %91 = vector.broadcast %90 : vector<1x192xf32> to vector<3x192xf32>
    %92 = arith.addf %89, %91 : vector<3x192xf32>
    %cst_50 = arith.constant 0.000000e+00 : f32
    %93 = vector.broadcast %cst_50 : f32 to vector<3x192xf32>
    %94 = arith.maximumf %92, %93 : vector<3x192xf32>
    %95 = arith.truncf %94 : vector<3x192xf32> to vector<3x192xbf16>
    %cst_51 = arith.constant 0.000000e+00 : f32
    %96 = vector.broadcast %cst_51 : f32 to vector<1x64xf32>
    %97 = vector.extract_strided_slice %95 {offsets = [0, 0], sizes = [1, 192], strides = [1, 1]} : vector<3x192xbf16> to vector<1x192xbf16>
    %c0_52 = arith.constant 0 : index
    %c0_53 = arith.constant 0 : index
    %c0_54 = arith.constant 0 : index
    %98 = vector.load %arg6[%c0_52, %c0_53, %c0_54] : memref<3x192x64xbf16, #tpu.memory_space<vmem>>, vector<1x192x64xbf16>
    %99 = vector.shape_cast %98 : vector<1x192x64xbf16> to vector<192x64xbf16>
    %cst_55 = arith.constant dense<0.000000e+00> : vector<1x64xf32>
    %100 = tpu.matmul %97, %99, %cst_55 {dimension_numbers = #tpu.dot_dimension_numbers<[1], [0], [0], [1], [0, 0, 1, 1], [], []>} : vector<1x192xbf16>, vector<192x64xbf16>, vector<1x64xf32> -> vector<1x64xf32>
    %101 = arith.addf %96, %100 : vector<1x64xf32>
    %102 = vector.extract_strided_slice %95 {offsets = [1, 0], sizes = [1, 192], strides = [1, 1]} : vector<3x192xbf16> to vector<1x192xbf16>
    %c1_56 = arith.constant 1 : index
    %c0_57 = arith.constant 0 : index
    %c0_58 = arith.constant 0 : index
    %103 = vector.load %arg6[%c1_56, %c0_57, %c0_58] : memref<3x192x64xbf16, #tpu.memory_space<vmem>>, vector<1x192x64xbf16>
    %104 = vector.shape_cast %103 : vector<1x192x64xbf16> to vector<192x64xbf16>
    %cst_59 = arith.constant dense<0.000000e+00> : vector<1x64xf32>
    %105 = tpu.matmul %102, %104, %cst_59 {dimension_numbers = #tpu.dot_dimension_numbers<[1], [0], [0], [1], [0, 0, 1, 1], [], []>} : vector<1x192xbf16>, vector<192x64xbf16>, vector<1x64xf32> -> vector<1x64xf32>
    %106 = arith.addf %101, %105 : vector<1x64xf32>
    %107 = vector.extract_strided_slice %95 {offsets = [2, 0], sizes = [1, 192], strides = [1, 1]} : vector<3x192xbf16> to vector<1x192xbf16>
    %c2_60 = arith.constant 2 : index
    %c0_61 = arith.constant 0 : index
    %c0_62 = arith.constant 0 : index
    %108 = vector.load %arg6[%c2_60, %c0_61, %c0_62] : memref<3x192x64xbf16, #tpu.memory_space<vmem>>, vector<1x192x64xbf16>
    %109 = vector.shape_cast %108 : vector<1x192x64xbf16> to vector<192x64xbf16>
    %cst_63 = arith.constant dense<0.000000e+00> : vector<1x64xf32>
    %110 = tpu.matmul %107, %109, %cst_63 {dimension_numbers = #tpu.dot_dimension_numbers<[1], [0], [0], [1], [0, 0, 1, 1], [], []>} : vector<1x192xbf16>, vector<192x64xbf16>, vector<1x64xf32> -> vector<1x64xf32>
    %111 = arith.addf %106, %110 : vector<1x64xf32>
    %c0_64 = arith.constant 0 : index
    %c0_65 = arith.constant 0 : index
    %112 = vector.load %arg7[%c0_64, %c0_65] : memref<1x64xf32, #tpu.memory_space<vmem>>, vector<1x64xf32>
    %113 = arith.addf %111, %112 : vector<1x64xf32>
    %cst_66 = arith.constant 0.000000e+00 : f32
    %114 = vector.broadcast %cst_66 : f32 to vector<1x64xf32>
    %115 = arith.maximumf %113, %114 : vector<1x64xf32>
    %116 = arith.truncf %115 : vector<1x64xf32> to vector<1x64xbf16>
    %cst_67 = arith.constant 0.000000e+00 : f32
    %117 = vector.broadcast %cst_67 : f32 to vector<1x512xf32>
    %c0_68 = arith.constant 0 : index
    %c0_69 = arith.constant 0 : index
    %c0_70 = arith.constant 0 : index
    %118 = vector.load %arg8[%c0_68, %c0_69, %c0_70] : memref<1x64x512xbf16, #tpu.memory_space<vmem>>, vector<1x64x512xbf16>
    %119 = vector.shape_cast %118 : vector<1x64x512xbf16> to vector<64x512xbf16>
    %cst_71 = arith.constant dense<0.000000e+00> : vector<1x512xf32>
    %120 = tpu.matmul %116, %119, %cst_71 {dimension_numbers = #tpu.dot_dimension_numbers<[1], [0], [0], [1], [0, 0, 1, 1], [], []>} : vector<1x64xbf16>, vector<64x512xbf16>, vector<1x512xf32> -> vector<1x512xf32>
    %121 = arith.addf %117, %120 : vector<1x512xf32>
    %c0_72 = arith.constant 0 : index
    %c0_73 = arith.constant 0 : index
    %122 = vector.load %arg9[%c0_72, %c0_73] : memref<1x512xf32, #tpu.memory_space<vmem>>, vector<1x512xf32>
    %123 = arith.addf %121, %122 : vector<1x512xf32>
    %cst_74 = arith.constant 0.000000e+00 : f32
    %124 = vector.broadcast %cst_74 : f32 to vector<1x512xf32>
    %125 = arith.maximumf %123, %124 : vector<1x512xf32>
    %126 = arith.truncf %125 : vector<1x512xf32> to vector<1x512xbf16>
    %c0_75 = arith.constant 0 : index
    %c0_76 = arith.constant 0 : index
    %127 = vector.load %arg10[%c0_75, %c0_76] : memref<512x6xbf16, #tpu.memory_space<vmem>>, vector<512x6xbf16>
    %cst_77 = arith.constant dense<0.000000e+00> : vector<1x6xf32>
    %128 = tpu.matmul %126, %127, %cst_77 {dimension_numbers = #tpu.dot_dimension_numbers<[1], [0], [0], [1], [0, 0, 1, 1], [], []>} : vector<1x512xbf16>, vector<512x6xbf16>, vector<1x6xf32> -> vector<1x6xf32>
    %c0_78 = arith.constant 0 : index
    %c0_79 = arith.constant 0 : index
    %129 = vector.load %arg11[%c0_78, %c0_79] : memref<1x6xf32, #tpu.memory_space<vmem>>, vector<1x6xf32>
    %130 = arith.addf %128, %129 : vector<1x6xf32>
    %c0_80 = arith.constant 0 : index
    %c0_81 = arith.constant 0 : index
    %c0_82 = arith.constant 0 : index
    %131 = vector.load %arg12[%c0_80, %c0_81, %c0_82] : memref<1x1x6xf32, #tpu.memory_space<vmem>>, vector<1x1x6xf32>
    %132 = vector.shape_cast %131 : vector<1x1x6xf32> to vector<1x6xf32>
    %133 = vector.shape_cast %130 : vector<1x6xf32> to vector<1x1x6xf32>
    tpu.vector_store %arg12[%c0_80, %c0_81, %c0_82], %133 {strides = array<i32>} : memref<1x1x6xf32, #tpu.memory_space<vmem>>, vector<1x1x6xf32>,
    return
  }
  func.func @transform_0(%arg0: i32) -> (i32, i32, i32, i32) {
    %c0_i32 = arith.constant 0 : i32
    %c0_i32_0 = arith.constant 0 : i32
    %c0_i32_1 = arith.constant 0 : i32
    %c0_i32_2 = arith.constant 0 : i32
    return %arg0, %c0_i32, %c0_i32_0, %c0_i32_1 : i32, i32, i32, i32
  }
  func.func @transform_1(%arg0: i32) -> (i32, i32, i32) {
    %c0_i32 = arith.constant 0 : i32
    %c0_i32_0 = arith.constant 0 : i32
    %c0_i32_1 = arith.constant 0 : i32
    %c0_i32_2 = arith.constant 0 : i32
    return %c0_i32, %c0_i32_0, %c0_i32_1 : i32, i32, i32
  }
  func.func @transform_2(%arg0: i32) -> (i32, i32) {
    %c0_i32 = arith.constant 0 : i32
    %c0_i32_0 = arith.constant 0 : i32
    %c0_i32_1 = arith.constant 0 : i32
    return %c0_i32, %c0_i32_0 : i32, i32
  }
  func.func @transform_3(%arg0: i32) -> (i32, i32, i32) {
    %c0_i32 = arith.constant 0 : i32
    %c0_i32_0 = arith.constant 0 : i32
    %c0_i32_1 = arith.constant 0 : i32
    %c0_i32_2 = arith.constant 0 : i32
    return %c0_i32, %c0_i32_0, %c0_i32_1 : i32, i32, i32
  }
  func.func @transform_4(%arg0: i32) -> (i32, i32) {
    %c0_i32 = arith.constant 0 : i32
    %c0_i32_0 = arith.constant 0 : i32
    %c0_i32_1 = arith.constant 0 : i32
    return %c0_i32, %c0_i32_0 : i32, i32
  }
  func.func @transform_5(%arg0: i32) -> (i32, i32, i32) {
    %c0_i32 = arith.constant 0 : i32
    %c0_i32_0 = arith.constant 0 : i32
    %c0_i32_1 = arith.constant 0 : i32
    %c0_i32_2 = arith.constant 0 : i32
    return %c0_i32, %c0_i32_0, %c0_i32_1 : i32, i32, i32
  }
  func.func @transform_6(%arg0: i32) -> (i32, i32) {
    %c0_i32 = arith.constant 0 : i32
    %c0_i32_0 = arith.constant 0 : i32
    %c0_i32_1 = arith.constant 0 : i32
    return %c0_i32, %c0_i32_0 : i32, i32
  }
  func.func @transform_7(%arg0: i32) -> (i32, i32, i32) {
    %c0_i32 = arith.constant 0 : i32
    %c0_i32_0 = arith.constant 0 : i32
    %c0_i32_1 = arith.constant 0 : i32
    %c0_i32_2 = arith.constant 0 : i32
    return %c0_i32, %c0_i32_0, %c0_i32_1 : i32, i32, i32
  }
  func.func @transform_8(%arg0: i32) -> (i32, i32) {
    %c0_i32 = arith.constant 0 : i32
    %c0_i32_0 = arith.constant 0 : i32
    %c0_i32_1 = arith.constant 0 : i32
    return %c0_i32, %c0_i32_0 : i32, i32
  }
  func.func @transform_9(%arg0: i32) -> (i32, i32) {
    %c0_i32 = arith.constant 0 : i32
    %c0_i32_0 = arith.constant 0 : i32
    %c0_i32_1 = arith.constant 0 : i32
    return %c0_i32, %c0_i32_0 : i32, i32
  }
  func.func @transform_10(%arg0: i32) -> (i32, i32) {
    %c0_i32 = arith.constant 0 : i32
    %c0_i32_0 = arith.constant 0 : i32
    %c0_i32_1 = arith.constant 0 : i32
    return %c0_i32, %c0_i32_0 : i32, i32
  }
  func.func @transform_11(%arg0: i32) -> (i32, i32, i32) {
    %c0_i32 = arith.constant 0 : i32
    %c0_i32_0 = arith.constant 0 : i32
    %c0_i32_1 = arith.constant 0 : i32
    return %arg0, %c0_i32, %c0_i32_0 : i32, i32, i32
  }
}

</mosaic_0001>

<bundles_post_ra>
// kernel: nn_forward.1
= control target key start
LH: loop header
LB: loop body
LE: loop exit
PB: predicated region body
PF: predicated region fallthrough
CT: control target
= control target key end

     0   :  { %16 = vsyncpa [#allocation3], 0  ;;  %s6576_s0 = inlined_call_operand.vmem [shape: bf16[2,4,9,144], index: 0, kind: input, shape index: {}]   ;;  %s6577_s1 = inlined_call_operand.vmem [shape: bf16[8,144,256], index: 1, kind: input, shape index: {}]   ;;  %s6578_s2 = inlined_call_operand.vmem [shape: f32[1,256], index: 2, kind: input, shape index: {}]   ;;  %s6579_s3 = inlined_call_operand.vmem [shape: bf16[4,256,192], index: 3, kind: input, shape index: {}]   ;;  %s6580_s4 = inlined_call_operand.vmem [shape: f32[1,192], index: 4, kind: input, shape index: {}]   ;;  %s6581_s5 = inlined_call_operand.vmem [shape: bf16[3,192,64], index: 5, kind: input, shape index: {}]   ;;  %s6582_s6 = inlined_call_operand.vmem [shape: f32[1,64], index: 6, kind: input, shape index: {}]   ;;  %s6583_s7 = inlined_call_operand.vmem [shape: bf16[1,64,512], index: 7, kind: input, shape index: {}]   ;;  %s6584_s8 = inlined_call_operand.vmem [shape: f32[1,512], index: 8, kind: input, shape index: {}]   ;;  %s6585_s9 = inlined_call_operand.vmem [shape: bf16[512,6], index: 9, kind: input, shape index: {}]   ;;  %s6586_s10 = inlined_call_operand.vmem [shape: f32[1,6], index: 10, kind: input, shape index: {}]   ;;  %s6587_s11 = inlined_call_operand.hbm [shape: f32[2,1,6], index: 11, kind: output, shape index: {}]  }
   0x1   :  { %18 = vsyncpa [#allocation3 + $0x1], 0  ;;  %s5233_s17 = smov 0   ;;  %s5235_s18 = smov 0  }
   0x2   :  { %s5237_s19 = smov 0   ;;  %s5239_s20 = smov 0  }
   0x3 LB: > { %6589 = sst [smem:[#allocation5_spill]] %s5165_s19  ;;  %s5254_s21 = sadd.s32 4294967295, %s5169_s20   ;;  %s5169_s20 = sphi %s5239_s20, %s6599_s20   ;;  %s5165_s19 = sphi %s5237_s19, %s6596_s19   ;;  %s5161_s18 = sphi %s5235_s18, %s6598_s18   ;;  %s5157_s17 = sphi %s5233_s17, %s6597_s17  }
   0x4   : > { %s3842_s22 = sadd.s32 4294967294, %s5169_s20   ;;  %s5258_s23 = sadd.s32 1, %s5169_s20  }
   0x5   : > { %s267_s24 = sadd.s32 1, %s5165_s19  ;;  %s264_s25 = ssub.s32 %s5169_s20, %s5258_s23 }
   0x6   : > { %p277_p0 = scmp.ne.s32.totalorder %s5165_s19, %s5161_s18  ;;  %p265_p1 = scmp.eq.s32.totalorder %s264_s25, 0 }
   0x7   : > { %p278_p2 = scmp.eq.s32.totalorder %s5254_s21, 1  ;;  %p283_p3 = scmp.ne.s32.totalorder %s5161_s18, %s5157_s17 }
   0x8   : > { %p284_p4 = scmp.eq.s32.totalorder %s3842_s22, 1  ;;  %p3845_p7 = scmp.ge.s32.totalorder %s5169_s20, 1 }
   0x9   : > { %s5269_s26 = scalar_select %p265_p1, %s5165_s19, %s267_s24  }
   0xa   : > { %p5271_p5 = por %p278_p2, %p277_p0  ;;  %p5275_p6 = por %p284_p4, %p283_p3 }
   0xb   : > { %6590 = sst [smem:[#allocation6_spill]] %s5269_s26  ;;  %p340_p8 = scmp.lt.s32.totalorder %s5169_s20, 3 }
   0xd   : > { %p341_p9 = pnand %p3845_p7, %p340_p8 }
   0xe   : > { %v4591_v0 = vld [vmem:[%s6577_s1 + $0x94] ss:$8 sps:$4 sm:$0xff] (!%p341_p9)   ;;  %v4593_v1 = vld [vmem:[%s6577_s1 + $0x4] ss:$8 sps:$4 sm:$0xff] (!%p341_p9)   ;;  %v4595_v2 = vld [vmem:[%s6577_s1 + $0x90] ss:$8 sps:$4 sm:$0xff] (!%p341_p9)  }
   0xf   : > { %344 = sbr.rel (%p341_p9) target bundleno = 1413 (0x585), region = 64  ;;  %530 = vmatprep.subr.bf16.mxu0 (!%p341_p9), %v4591_v0  ;;  %v4596_v3 = vld [vmem:[%s6577_s1] ss:$8 sps:$4 sm:$0xff] (!%p341_p9)   ;;  %670 = vmatprep.subr.bf16.mxu1 (!%p341_p9), %v4593_v1  ;;  %v4597_v4 = vld [vmem:[%s6577_s1 + $0xa4] ss:$8 sps:$4 sm:$0xff] (!%p341_p9)   ;;  %p379_p10 = scmp.lt.s32.totalorder (!%p341_p9), %s5254_s21, 1 }
  0x10   : > { %531 = vmatpush1.bf16.msra.mxu0 (!%p341_p9), %v4595_v2  ;;  %671 = vmatpush1.bf16.msra.mxu1 (!%p341_p9), %v4596_v3  ;;  %v4599_v5 = vld [vmem:[%s6577_s1 + $0x14] ss:$8 sps:$4 sm:$0xff] (!%p341_p9)   ;;  %v4601_v6 = vld [vmem:[%s6577_s1 + $0xa0] ss:$8 sps:$4 sm:$0xff] (!%p341_p9)   ;;  %v4602_v7 = vld [vmem:[%s6577_s1 + $0x10] ss:$8 sps:$4 sm:$0xff] (!%p341_p9)  }
  0x11   : > { %532 = vmatprep.subr.bf16.mxu0 (!%p341_p9), %v4597_v4  ;;  %672 = vmatprep.subr.bf16.mxu1 (!%p341_p9), %v4599_v5  ;;  %v4603_v8 = vld [vmem:[%s6577_s1 + $0xb4] ss:$8 sps:$4 sm:$0xff] (!%p341_p9)   ;;  %v4605_v9 = vld [vmem:[%s6577_s1 + $0x24] ss:$8 sps:$4 sm:$0xff] (!%p341_p9)   ;;  %v4607_v10 = vld [vmem:[%s6577_s1 + $0xb0] ss:$8 sps:$4 sm:$0xff] (!%p341_p9)  }
  0x12   : > { %v4608_v11 = vld [vmem:[%s6577_s1 + $0x20] ss:$8 sps:$4 sm:$0xff] (!%p341_p9)   ;;  %v4609_v12 = vld [vmem:[%s6577_s1 + $0xc4] ss:$8 sps:$4 sm:$0xff] (!%p341_p9)   ;;  %v4611_v13 = vld [vmem:[%s6577_s1 + $0x34] ss:$8 sps:$4 sm:$0xff] (!%p341_p9)  }
  0x13   : > { %v4613_v14 = vld [vmem:[%s6577_s1 + $0xc0] ss:$8 sps:$4 sm:$0xff] (!%p341_p9)   ;;  %v4614_v15 = vld [vmem:[%s6577_s1 + $0x30] ss:$8 sps:$4 sm:$0xff] (!%p341_p9)   ;;  %v4615_v16 = vld [vmem:[%s6577_s1 + $0xd4] ss:$8 sps:$4 sm:$0xff] (!%p341_p9)  }
  0x14   : > { %533 = vmatpush1.bf16.msra.mxu0 (!%p341_p9), %v4601_v6  ;;  %673 = vmatpush1.bf16.msra.mxu1 (!%p341_p9), %v4602_v7  ;;  %v4617_v17 = vld [vmem:[%s6577_s1 + $0x44] ss:$8 sps:$4 sm:$0xff] (!%p341_p9)   ;;  %v4619_v18 = vld [vmem:[%s6577_s1 + $0xd0] ss:$8 sps:$4 sm:$0xff] (!%p341_p9)   ;;  %v4620_v19 = vld [vmem:[%s6577_s1 + $0x40] ss:$8 sps:$4 sm:$0xff] (!%p341_p9)  }
  0x15   : > { %534 = vmatprep.subr.bf16.mxu0 (!%p341_p9), %v4603_v8  ;;  %674 = vmatprep.subr.bf16.mxu1 (!%p341_p9), %v4605_v9  ;;  %v4621_v20 = vld [vmem:[%s6577_s1 + $0xe4] ss:$8 sps:$4 sm:$0xff] (!%p341_p9)   ;;  %v4623_v21 = vld [vmem:[%s6577_s1 + $0x54] ss:$8 sps:$4 sm:$0xff] (!%p341_p9)   ;;  %v4625_v22 = vld [vmem:[%s6577_s1 + $0xe0] ss:$8 sps:$4 sm:$0xff] (!%p341_p9)  }
  0x16   : > { %s380_s16 = scalar_select %p379_p10, %s5254_s21, 1  ;;  %v4626_v23 = vld [vmem:[%s6577_s1 + $0x50] ss:$8 sps:$4 sm:$0xff]   ;;  %v4627_v24 = vld [vmem:[%s6577_s1 + $0xf4] ss:$8 sps:$4 sm:$0xff]   ;;  %vm526_vm0 = vcmask 130048  }
  0x17   : > { %v4629_v25 = vld [vmem:[%s6577_s1 + $0x64] ss:$8 sps:$4 sm:$0xff]   ;;  %v4631_v26 = vld [vmem:[%s6577_s1 + $0xf0] ss:$8 sps:$4 sm:$0xff]   ;;  %v4632_v27 = vld [vmem:[%s6577_s1 + $0x60] ss:$8 sps:$4 sm:$0xff]  }
  0x18   : > { %535 = vmatpush1.bf16.msra.mxu0 %v4607_v10  ;;  %675 = vmatpush1.bf16.msra.mxu1 %v4608_v11  ;;  %s4506_s14 = sshll.u32 %s380_s16, 6  ;;  %v4633_v28 = vld [vmem:[%s6577_s1 + $0x104] ss:$8 sps:$4 sm:$0xff]   ;;  %v4635_v31 = vld [vmem:[%s6577_s1 + $0x74] ss:$8 sps:$4 sm:$0xff]   ;;  %vm1765_vm1 = vcmask 1040384  }
  0x19   : > { %536 = vmatprep.subr.bf16.mxu0 %v4609_v12  ;;  %676 = vmatprep.subr.bf16.mxu1 %v4611_v13  ;;  %s5364_s15 = scalar_lea.vmem %s6576_s0, %s4506_s14  ;;  %v4637_v34 = vld [vmem:[%s6577_s1 + $0x100] ss:$8 sps:$4 sm:$0xff]   ;;  %v4638_v35 = vld [vmem:[%s6577_s1 + $0x70] ss:$8 sps:$4 sm:$0xff]   ;;  %v4639_v36 = vld [vmem:[%s6577_s1 + $0x114] ss:$8 sps:$4 sm:$0xff]  }
  0x1a   : > { %v5376_v29 = vld [vmem:[%s5364_s15 + $0x10] sm:$0xff]  ;;  %v5379_v30 = vld [vmem:[%s5364_s15] sm:$0xff]  ;;  %v5503_v8 = vld [vmem:[%s5364_s15 + $0x18] sm:$0x11]  ;;  %vm1766_vm2 = vsmask.f32 256 }
  0x1b   : > { %v3867_v32 = vcombine.high %v5376_v29, %v5376_v29  ;;  %v3888_v33 = vcombine.high %v5379_v30, %v5379_v30  ;;  %v4641_v37 = vld [vmem:[%s6577_s1 + $0x84] ss:$8 sps:$4 sm:$0xff]   ;;  %v4643_v38 = vld [vmem:[%s6577_s1 + $0x110] ss:$8 sps:$4 sm:$0xff]   ;;  %v4644_v39 = vld [vmem:[%s6577_s1 + $0x80] ss:$8 sps:$4 sm:$0xff]   ;;  %v3866_v42 = vcombine.low %v5376_v29, %v5376_v29  ;;  %v3887_v43 = vcombine.low %v5379_v30, %v5379_v30 }
  0x1c   : > { %537 = vmatpush1.bf16.msra.mxu0 %v4613_v14  ;;  %677 = vmatpush1.bf16.msra.mxu1 %v4614_v15  ;;  %v4655_v40 = vld [vmem:[%s6577_s1 + $0x124] ss:$8 sps:$4 sm:$0xff]   ;;  %v4658_v41 = vld [vmem:[%s6577_s1 + $0x1b4] ss:$8 sps:$4 sm:$0xff]   ;;  %v4653_v44 = vld [vmem:[%s6577_s1 + $0x120] ss:$8 sps:$4 sm:$0xff]   ;;  %v4044_v14 = vcombine.high %v5376_v29, %v5503_v8 }
  0x1d   : > { %538 = vmatprep.subr.bf16.mxu0 %v4615_v16  ;;  %678 = vmatprep.subr.bf16.mxu1 %v4617_v17  ;;  %v4656_v45 = vld [vmem:[%s6577_s1 + $0x1b0] ss:$8 sps:$4 sm:$0xff]   ;;  %v4661_v46 = vld [vmem:[%s6577_s1 + $0x134] ss:$8 sps:$4 sm:$0xff]   ;;  %v4664_v47 = vld [vmem:[%s6577_s1 + $0x1c4] ss:$8 sps:$4 sm:$0xff]  }
  0x1e   : > { %3886 = vmatprep.mubr.msk.bf16.mxu0 %vm526_vm0, %v3867_v32  ;;  %3907 = vmatprep.mubr.msk.bf16.mxu1 %vm526_vm0, %v3888_v33  ;;  %v4659_v48 = vld [vmem:[%s6577_s1 + $0x130] ss:$8 sps:$4 sm:$0xff]   ;;  %v4662_v49 = vld [vmem:[%s6577_s1 + $0x1c0] ss:$8 sps:$4 sm:$0xff]   ;;  %v4667_v50 = vld [vmem:[%s6577_s1 + $0x144] ss:$8 sps:$4 sm:$0xff]  }
  0x1f   : > { %v4670_v51 = vld [vmem:[%s6577_s1 + $0x1d4] ss:$8 sps:$4 sm:$0xff]   ;;  %v4665_v52 = vld [vmem:[%s6577_s1 + $0x140] ss:$8 sps:$4 sm:$0xff]   ;;  %v4668_v53 = vld [vmem:[%s6577_s1 + $0x1d0] ss:$8 sps:$4 sm:$0xff]  }
  0x20   : > { %539 = vmatpush1.bf16.msra.mxu0 %v4619_v18  ;;  %679 = vmatpush1.bf16.msra.mxu1 %v4620_v19  ;;  %v4673_v54 = vld [vmem:[%s6577_s1 + $0x154] ss:$8 sps:$4 sm:$0xff]   ;;  %v4676_v55 = vld [vmem:[%s6577_s1 + $0x1e4] ss:$8 sps:$4 sm:$0xff]   ;;  %v4671_v56 = vld [vmem:[%s6577_s1 + $0x150] ss:$8 sps:$4 sm:$0xff]  }
  0x21   : > { %540 = vmatprep.subr.bf16.mxu0 %v4621_v20  ;;  %680 = vmatprep.subr.bf16.mxu1 %v4623_v21  ;;  %v4674_v57 = vld [vmem:[%s6577_s1 + $0x1e0] ss:$8 sps:$4 sm:$0xff]   ;;  %v4679_v58 = vld [vmem:[%s6577_s1 + $0x164] ss:$8 sps:$4 sm:$0xff]   ;;  %v4682_v59 = vld [vmem:[%s6577_s1 + $0x1f4] ss:$8 sps:$4 sm:$0xff]  }
  0x22   : > { %v5467_v60 = vld [vmem:[%s5364_s15 + $0x20] sm:$0xff]  ;;  %v5470_v61 = vld [vmem:[%s5364_s15 + $0x30] sm:$0xff]  ;;  %v5506_v9 = vld [vmem:[%s5364_s15 + $0x8] sm:$0x11]  ;;  %v1242_v21 = vshll.u32 %v4044_v14, 16  ;;  %vm2916_vm4 = vcmask 523264  }
  0x23   : > { %v3927_v62 = vcombine.high %v5467_v60, %v5467_v60  ;;  %v3966_v63 = vcombine.high %v5470_v61, %v5470_v61  ;;  %v4677_v0 = vld [vmem:[%s6577_s1 + $0x160] ss:$8 sps:$4 sm:$0xff]   ;;  %v4680_v1 = vld [vmem:[%s6577_s1 + $0x1f0] ss:$8 sps:$4 sm:$0xff]   ;;  %v4685_v2 = vld [vmem:[%s6577_s1 + $0x174] ss:$8 sps:$4 sm:$0xff]   ;;  %v4005_v15 = vcombine.high %v5379_v30, %v5506_v9  ;;  %v3926_v32 = vcombine.low %v5467_v60, %v5467_v60 }
  0x24   : > { %541 = vmatpush1.bf16.msra.mxu0 %v4625_v22  ;;  %681 = vmatpush1.bf16.msra.mxu1 %v4626_v23  ;;  %v4688_v3 = vld [vmem:[%s6577_s1 + $0x204] ss:$8 sps:$4 sm:$0xff]   ;;  %v4683_v4 = vld [vmem:[%s6577_s1 + $0x170] ss:$8 sps:$4 sm:$0xff]   ;;  %v4686_v5 = vld [vmem:[%s6577_s1 + $0x200] ss:$8 sps:$4 sm:$0xff]   ;;  %v3965_v33 = vcombine.low %v5470_v61, %v5470_v61 }
  0x25   : > { %542 = vmatprep.subr.bf16.mxu0 %v4627_v24  ;;  %682 = vmatprep.subr.bf16.mxu1 %v4629_v25  ;;  %v4691_v6 = vld [vmem:[%s6577_s1 + $0x184] ss:$8 sps:$4 sm:$0xff]   ;;  %v4694_v7 = vld [vmem:[%s6577_s1 + $0x214] ss:$8 sps:$4 sm:$0xff]   ;;  %v4689_v10 = vld [vmem:[%s6577_s1 + $0x180] ss:$8 sps:$4 sm:$0xff]  }
  0x26   : > { %v4692_v11 = vld [vmem:[%s6577_s1 + $0x210] ss:$8 sps:$4 sm:$0xff]   ;;  %v4697_v12 = vld [vmem:[%s6577_s1 + $0x194] ss:$8 sps:$4 sm:$0xff]   ;;  %v4700_v13 = vld [vmem:[%s6577_s1 + $0x224] ss:$8 sps:$4 sm:$0xff]  }
  0x27   : > { %v4695_v16 = vld [vmem:[%s6577_s1 + $0x190] ss:$8 sps:$4 sm:$0xff]   ;;  %v4698_v17 = vld [vmem:[%s6577_s1 + $0x220] ss:$8 sps:$4 sm:$0xff]   ;;  %v4703_v18 = vld [vmem:[%s6577_s1 + $0x1a4] ss:$8 sps:$4 sm:$0xff]  }
  0x28   : > { %543 = vmatpush1.bf16.msra.mxu0 %v4631_v26  ;;  %683 = vmatpush1.bf16.msra.mxu1 %v4632_v27  ;;  %v4706_v19 = vld [vmem:[%s6577_s1 + $0x234] ss:$8 sps:$4 sm:$0xff]   ;;  %v1067_v20 = vshll.u32 %v4005_v15, 16  ;;  %v4701_v22 = vld [vmem:[%s6577_s1 + $0x1a0] ss:$8 sps:$4 sm:$0xff]   ;;  %v1065_v26 = vshrl.u32 %v4005_v15, 16  ;;  %vm5996_vm3 = vmand %vm1765_vm1, %vm1766_vm2 }
  0x29   : > { %544 = vmatprep.subr.bf16.mxu0 %v4633_v28  ;;  %684 = vmatprep.subr.bf16.mxu1 %v4635_v31  ;;  %v4704_v23 = vld [vmem:[%s6577_s1 + $0x230] ss:$8 sps:$4 sm:$0xff]   ;;  %v4713_v24 = vld [vmem:[%s6577_s1 + $0x244] ss:$8 sps:$4 sm:$0xff]   ;;  %v4716_v25 = vld [vmem:[%s6577_s1 + $0x2d4] ss:$8 sps:$4 sm:$0xff]  }
  0x2a   : > { %v1069_v27 = vrot.slane %v1067_v20, 1  ;;  %v1240_v28 = vshrl.u32 %v4044_v14, 16  ;;  %v1244_v31 = vrot.slane %v1242_v21, 1  ;;  %v4762_v14 = vld [vmem:[%s6577_s1 + $0x350] ss:$8 sps:$4 sm:$0xff]   ;;  %s377_s12 = sand.u32 1, %s5161_s18  }
  0x2b   : > { %v4767_v20 = vld [vmem:[%s6577_s1 + $0x364] ss:$8 sps:$4 sm:$0xff]   ;;  %v4770_v21 = vld [vmem:[%s6577_s1 + $0x3f4] ss:$8 sps:$4 sm:$0xff]   ;;  %s4503_s22 = sshll.u32 %s5254_s21, 4  ;;  %s378_s26 = scalar_lea.vmem [#allocation2], %s377_s12 }
  0x2c   : > { %545 = vmatpush1.bf16.msra.mxu0 %v4637_v34  ;;  %685 = vmatpush1.bf16.msra.mxu1 %v4638_v35  ;;  %v4711_v34 = vld [vmem:[%s6577_s1 + $0x240] ss:$8 sps:$4 sm:$0xff]   ;;  %v4714_v35 = vld [vmem:[%s6577_s1 + $0x2d0] ss:$8 sps:$4 sm:$0xff]   ;;  %s3787_s24 = sshll.u32 %s378_s26, 4  ;;  %vm3772_vm5 = vcmask 40960   ;;  %s6536_s24 = int_to_ptr.vmem [resolvable:$true] %s3787_s24 }
  0x2d   : > { %546 = vmatprep.subr.bf16.mxu0 %v4639_v36  ;;  %686 = vmatprep.subr.bf16.mxu1 %v4641_v37  ;;  %v4719_v36 = vld [vmem:[%s6577_s1 + $0x254] ss:$8 sps:$4 sm:$0xff]   ;;  %v4722_v37 = vld [vmem:[%s6577_s1 + $0x2e4] ss:$8 sps:$4 sm:$0xff]   ;;  %s3775_s21 = scalar_lea.sflag [#allocation3], %s377_s12  ;;  %s5107_s19 = scalar_lea.vmem %s6536_s24, 16 }
  0x2e   : > { %p5108_p11 = scmp.ne.s32.totalorder %s6536_s24, %s5107_s19  ;;  %s5172_s14 = smov [#allocation2]  }
  0x2f   : > { %s5111_s30 = sshll.u32 %s5172_s14, 4  ;;  %s5112_s30 = int_to_ptr.vmem [resolvable:$false] %s5111_s30 }
  0x30   : > { %547 = vmatpush1.bf16.msra.mxu0 %v4643_v38  ;;  %687 = vmatpush1.bf16.msra.mxu1 %v4644_v39  ;;  %v1070_v38 = vor.u32 %v1069_v27, %v1065_v26  ;;  %v1245_v39 = vor.u32 %v1244_v31, %v1240_v28  ;;  %p5109_p12 = pnand %p5108_p11, %p5271_p5  ;;  %s5113_s16 = scalar_lea.vmem %s5112_s30, 32 }
  0x31   : > { %829 = vmatprep.subr.bf16.mxu0 %v4655_v40  ;;  %990 = vmatprep.subr.bf16.mxu1 %v4658_v41  ;;  %v4717_v40 = vld [vmem:[%s6577_s1 + $0x250] ss:$8 sps:$4 sm:$0xff]   ;;  %v4720_v41 = vld [vmem:[%s6577_s1 + $0x2e0] ss:$8 sps:$4 sm:$0xff]   ;;  %p5114_p0 = scmp.lt.s32.totalorder %s6536_s24, %s5112_s30  ;;  %p5115_p1 = scmp.lt.s32.totalorder %s5113_s16, %s5107_s19 }
  0x32   : > { %p5110_p13 = pneg %p5109_p12 }
  0x33   : > { %563 = vmatmul.mubr.bf16.vlgmr.msra.gmra.mrb[0].mxu0 %v3866_v42  ;;  %703 = vmatmul.mubr.bf16.vlgmr.msra.gmra.mrb[0].mxu1 %v3887_v43  ;;  %v4725_v42 = vld [vmem:[%s6577_s1 + $0x264] ss:$8 sps:$4 sm:$0xff]   ;;  %v4728_v43 = vld [vmem:[%s6577_s1 + $0x2f4] ss:$8 sps:$4 sm:$0xff]   ;;  %p5116_p2 = por %p5115_p1, %p5114_p0 }
  0x34   : > { %830 = vmatpush1.bf16.msra.mxu0 %v4653_v44  ;;  %991 = vmatpush1.bf16.msra.mxu1 %v4656_v45  ;;  %v4723_v44 = vld [vmem:[%s6577_s1 + $0x260] ss:$8 sps:$4 sm:$0xff]   ;;  %v4726_v45 = vld [vmem:[%s6577_s1 + $0x2f0] ss:$8 sps:$4 sm:$0xff]  }
  0x35   : > { %831 = vmatprep.subr.bf16.mxu0 %v4661_v46  ;;  %992 = vmatprep.subr.bf16.mxu1 %v4664_v47  ;;  %v4731_v46 = vld [vmem:[%s6577_s1 + $0x274] ss:$8 sps:$4 sm:$0xff]   ;;  %v4734_v47 = vld [vmem:[%s6577_s1 + $0x304] ss:$8 sps:$4 sm:$0xff]   ;;  %p5117_p3 = pnand %p5116_p2, %p5110_p13 }
  0x36   : > { %3946 = vmatprep.mubr.msk.bf16.mxu0 %vm526_vm0, %v3927_v62  ;;  %3985 = vmatprep.mubr.msk.bf16.mxu1 %vm526_vm0, %v3966_v63  ;;  %v4043_v62 = vcombine.low %v5376_v29, %v5503_v8  ;;  %v4004_v63 = vcombine.low %v5379_v30, %v5506_v9  ;;  %v4758_v29 = vld [vmem:[%s6577_s1 + $0x344] ss:$8 sps:$4 sm:$0xff]   ;;  %v4753_v30 = vld [vmem:[%s6577_s1 + $0x2b0] ss:$8 sps:$4 sm:$0xff]  }
  0x38   : > { %832 = vmatpush1.bf16.msra.mxu0 %v4659_v48  ;;  %993 = vmatpush1.bf16.msra.mxu1 %v4662_v49  ;;  %v4729_v48 = vld [vmem:[%s6577_s1 + $0x270] ss:$8 sps:$4 sm:$0xff]   ;;  %v4732_v49 = vld [vmem:[%s6577_s1 + $0x300] ss:$8 sps:$4 sm:$0xff]   ;;  %v1235_v8 = vshll.u32 %v4043_v62, 16 }
  0x39   : > { %833 = vmatprep.subr.bf16.mxu0 %v4667_v50  ;;  %994 = vmatprep.subr.bf16.mxu1 %v4670_v51  ;;  %v4737_v50 = vld [vmem:[%s6577_s1 + $0x284] ss:$8 sps:$4 sm:$0xff]   ;;  %v4740_v51 = vld [vmem:[%s6577_s1 + $0x314] ss:$8 sps:$4 sm:$0xff]  }
  0x3c   : > { %834 = vmatpush1.bf16.msra.mxu0 %v4665_v52  ;;  %995 = vmatpush1.bf16.msra.mxu1 %v4668_v53  ;;  %v4735_v52 = vld [vmem:[%s6577_s1 + $0x280] ss:$8 sps:$4 sm:$0xff]   ;;  %v4738_v53 = vld [vmem:[%s6577_s1 + $0x310] ss:$8 sps:$4 sm:$0xff]  }
  0x3d   : > { %835 = vmatprep.subr.bf16.mxu0 %v4673_v54  ;;  %996 = vmatprep.subr.bf16.mxu1 %v4676_v55  ;;  %v4743_v54 = vld [vmem:[%s6577_s1 + $0x294] ss:$8 sps:$4 sm:$0xff]   ;;  %v4746_v55 = vld [vmem:[%s6577_s1 + $0x324] ss:$8 sps:$4 sm:$0xff]  }
  0x40   : > { %836 = vmatpush1.bf16.msra.mxu0 %v4671_v56  ;;  %997 = vmatpush1.bf16.msra.mxu1 %v4674_v57  ;;  %v4741_v56 = vld [vmem:[%s6577_s1 + $0x290] ss:$8 sps:$4 sm:$0xff]   ;;  %v4744_v57 = vld [vmem:[%s6577_s1 + $0x320] ss:$8 sps:$4 sm:$0xff]  }
  0x41   : > { %837 = vmatprep.subr.bf16.mxu0 %v4679_v58  ;;  %998 = vmatprep.subr.bf16.mxu1 %v4682_v59  ;;  %v4749_v58 = vld [vmem:[%s6577_s1 + $0x2a4] ss:$8 sps:$4 sm:$0xff]   ;;  %v4752_v59 = vld [vmem:[%s6577_s1 + $0x334] ss:$8 sps:$4 sm:$0xff]  }
  0x44   : > { %838 = vmatpush1.bf16.msra.mxu0 %v4677_v0  ;;  %999 = vmatpush1.bf16.msra.mxu1 %v4680_v1  ;;  %v4747_v0 = vld [vmem:[%s6577_s1 + $0x2a0] ss:$8 sps:$4 sm:$0xff]   ;;  %v4750_v1 = vld [vmem:[%s6577_s1 + $0x330] ss:$8 sps:$4 sm:$0xff]  }
  0x45   : > { %839 = vmatprep.subr.bf16.mxu0 %v4685_v2  ;;  %1000 = vmatprep.subr.bf16.mxu1 %v4688_v3  ;;  %v4755_v2 = vld [vmem:[%s6577_s1 + $0x2b4] ss:$8 sps:$4 sm:$0xff]   ;;  %v4756_v3 = vld [vmem:[%s6577_s1 + $0x340] ss:$8 sps:$4 sm:$0xff]  }
  0x48   : > { %840 = vmatpush1.bf16.msra.mxu0 %v4683_v4  ;;  %1001 = vmatpush1.bf16.msra.mxu1 %v4686_v5  ;;  %v5649_v4 = vld [vmem:[%s5364_s15 + $0x28] sm:$0x11]  ;;  %v5652_v5 = vld [vmem:[%s5364_s15 + $0x38] sm:$0x11]  ;;  %s6534_s15 = scalar_lea.hbm %s6587_s11, %s4503_s22 }
  0x49   : > { %841 = vmatprep.subr.bf16.mxu0 %v4691_v6  ;;  %1002 = vmatprep.subr.bf16.mxu1 %v4694_v7  ;;  %v4761_v6 = vld [vmem:[%s6577_s1 + $0x2c4] ss:$8 sps:$4 sm:$0xff]   ;;  %v1060_v7 = vshll.u32 %v4004_v63, 16  ;;  %v4083_v9 = vcombine.high %v5467_v60, %v5649_v4 }
  0x4b   : > { %v1417_v15 = vshll.u32 %v4083_v9, 16 }
  0x4c   : > { %842 = vmatpush1.bf16.msra.mxu0 %v4689_v10  ;;  %1003 = vmatpush1.bf16.msra.mxu1 %v4692_v11  ;;  %v4122_v10 = vcombine.high %v5470_v61, %v5652_v5  ;;  %v4764_v11 = vld [vmem:[%s6577_s1 + $0x354] ss:$8 sps:$4 sm:$0xff]  }
  0x4d   : > { %843 = vmatprep.subr.bf16.mxu0 %v4697_v12  ;;  %1004 = vmatprep.subr.bf16.mxu1 %v4700_v13  ;;  %v1058_v12 = vshrl.u32 %v4004_v63, 16  ;;  %v4759_v13 = vld [vmem:[%s6577_s1 + $0x2c0] ss:$8 sps:$4 sm:$0xff]   ;;  %v4121_v63 = vcombine.low %v5470_v61, %v5652_v5 }
  0x4e   : > { %v1590_v26 = vshrl.u32 %v4122_v10, 16 }
  0x50   : > { %844 = vmatpush1.bf16.msra.mxu0 %v4695_v16  ;;  %1005 = vmatpush1.bf16.msra.mxu1 %v4698_v17  ;;  %v1592_v16 = vshll.u32 %v4122_v10, 16  ;;  %v1062_v17 = vrot.slane %v1060_v7, 1  ;;  %v4823_v10 = vld [vmem:[%s6579_s3 + $0x100] ss:$8 sps:$4 sm:$0xff]  }
  0x51   : > { %845 = vmatprep.subr.bf16.mxu0 %v4703_v18  ;;  %1006 = vmatprep.subr.bf16.mxu1 %v4706_v19  ;;  %v1233_v18 = vshrl.u32 %v4043_v62, 16  ;;  %v1237_v19 = vrot.slane %v1235_v8, 1  ;;  %v4082_v62 = vcombine.low %v5467_v60, %v5649_v4  ;;  %v4818_v60 = vld [vmem:[%s6577_s1 + $0x474] ss:$8 sps:$4 sm:$0xff]  }
  0x52   : > { %v1594_v27 = vrot.slane %v1592_v16, 1  ;;  %v1063_v28 = vor.u32 %v1062_v17, %v1058_v12  ;;  %v4826_v12 = vld [vmem:[%s6579_s3] ss:$8 sps:$4 sm:$0xff]   ;;  %v4834_v16 = vld [vmem:[%s6579_s3 + $0x14] ss:$8 sps:$4 sm:$0xff]  }
  0x53   : > { %v1238_v31 = vor.u32 %v1237_v19, %v1233_v18  ;;  %v1410_v61 = vshll.u32 %v4082_v62, 16  ;;  %v1408_v4 = vshrl.u32 %v4082_v62, 16  ;;  %v4832_v17 = vld [vmem:[%s6579_s3 + $0x10] ss:$8 sps:$4 sm:$0xff]   ;;  %v4837_v18 = vld [vmem:[%s6579_s3 + $0x124] ss:$8 sps:$4 sm:$0xff]  }
  0x54   : > { %846 = vmatpush1.bf16.msra.mxu0 %v4701_v22  ;;  %1007 = vmatpush1.bf16.msra.mxu1 %v4704_v23  ;;  %v1415_v22 = vshrl.u32 %v4083_v9, 16  ;;  %v4765_v23 = vld [vmem:[%s6577_s1 + $0x360] ss:$8 sps:$4 sm:$0xff]   ;;  %v4840_v19 = vld [vmem:[%s6579_s3 + $0x24] ss:$8 sps:$4 sm:$0xff]  }
  0x55   : > { %1165 = vmatprep.subr.bf16.mxu0 %v4713_v24  ;;  %1340 = vmatprep.subr.bf16.mxu1 %v4716_v25  ;;  %v4768_v24 = vld [vmem:[%s6577_s1 + $0x3f0] ss:$8 sps:$4 sm:$0xff]   ;;  %v1419_v25 = vrot.slane %v1417_v15, 1  ;;  %v1412_v5 = vrot.slane %v1410_v61, 1  ;;  %v4897_v62 = vld [vmem:[%s6579_s3 + $0x1c4] ss:$8 sps:$4 sm:$0xff]  }
  0x56   : > { %v4829_v15 = vld [vmem:[%s6579_s3 + $0x110] ss:$8 sps:$4 sm:$0xff]   ;;  %v4906_v61 = vld [vmem:[%s6579_s3 + $0xd4] ss:$8 sps:$4 sm:$0xff]  }
  0x57   : > { %862 = vmatmul.mubr.bf16.vlgmr.msra.gmra.mrb[4].mxu0 %v3926_v32  ;;  %1023 = vmatmul.mubr.bf16.vlgmr.msra.gmra.mrb[4].mxu1 %v3965_v33  ;;  %v4773_v32 = vld [vmem:[%s6577_s1 + $0x374] ss:$8 sps:$4 sm:$0xff]   ;;  %v4776_v33 = vld [vmem:[%s6577_s1 + $0x404] ss:$8 sps:$4 sm:$0xff]   ;;  %v1413_v8 = vor.u32 %v1412_v5, %v1408_v4  ;;  %v4910_v5 = vld [vmem:[%s6579_s3 + $0xe0] ss:$8 sps:$4 sm:$0xff]  }
  0x58   : > { %1166 = vmatpush1.bf16.msra.mxu0 %v4711_v34  ;;  %1341 = vmatpush1.bf16.msra.mxu1 %v4714_v35  ;;  %v4771_v34 = vld [vmem:[%s6577_s1 + $0x370] ss:$8 sps:$4 sm:$0xff]   ;;  %v4774_v35 = vld [vmem:[%s6577_s1 + $0x400] ss:$8 sps:$4 sm:$0xff]   ;;  %v4912_v4 = vld [vmem:[%s6579_s3 + $0xe4] ss:$8 sps:$4 sm:$0xff]  }
  0x59   : > { %1167 = vmatprep.subr.bf16.mxu0 %v4719_v36  ;;  %1342 = vmatprep.subr.bf16.mxu1 %v4722_v37  ;;  %v1420_v36 = vor.u32 %v1419_v25, %v1415_v22  ;;  %v1595_v37 = vor.u32 %v1594_v27, %v1590_v26  ;;  %v4843_v22 = vld [vmem:[%s6579_s3 + $0x134] ss:$8 sps:$4 sm:$0xff]   ;;  %v4844_v25 = vld [vmem:[%s6579_s3 + $0x30] ss:$8 sps:$4 sm:$0xff]   ;;  %v4849_v26 = vld [vmem:[%s6579_s3 + $0x144] ss:$8 sps:$4 sm:$0xff]  }
  0x5a   : > { %4024 = vmatprep.mubr.msk.bf16.mxu0 %vm526_vm0, %v1070_v38  ;;  %4063 = vmatprep.mubr.msk.bf16.mxu1 %vm526_vm0, %v1245_v39  ;;  %v4779_v38 = vld [vmem:[%s6577_s1 + $0x384] ss:$8 sps:$4 sm:$0xff]   ;;  %v4782_v39 = vld [vmem:[%s6577_s1 + $0x414] ss:$8 sps:$4 sm:$0xff]   ;;  %v4847_v27 = vld [vmem:[%s6579_s3 + $0x140] ss:$8 sps:$4 sm:$0xff]  }
  0x5c   : > { %1168 = vmatpush1.bf16.msra.mxu0 %v4717_v40  ;;  %1343 = vmatpush1.bf16.msra.mxu1 %v4720_v41  ;;  %v4777_v40 = vld [vmem:[%s6577_s1 + $0x380] ss:$8 sps:$4 sm:$0xff]   ;;  %v4780_v41 = vld [vmem:[%s6577_s1 + $0x410] ss:$8 sps:$4 sm:$0xff]  }
  0x5d   : > { %1169 = vmatprep.subr.bf16.mxu0 %v4725_v42  ;;  %1344 = vmatprep.subr.bf16.mxu1 %v4728_v43  ;;  %v4785_v42 = vld [vmem:[%s6577_s1 + $0x394] ss:$8 sps:$4 sm:$0xff]   ;;  %v4788_v43 = vld [vmem:[%s6577_s1 + $0x424] ss:$8 sps:$4 sm:$0xff]  }
  0x60   : > { %1170 = vmatpush1.bf16.msra.mxu0 %v4723_v44  ;;  %1345 = vmatpush1.bf16.msra.mxu1 %v4726_v45  ;;  %v4783_v44 = vld [vmem:[%s6577_s1 + $0x390] ss:$8 sps:$4 sm:$0xff]   ;;  %v4786_v45 = vld [vmem:[%s6577_s1 + $0x420] ss:$8 sps:$4 sm:$0xff]  }
  0x61   : > { %1171 = vmatprep.subr.bf16.mxu0 %v4731_v46  ;;  %1346 = vmatprep.subr.bf16.mxu1 %v4734_v47  ;;  %v4791_v46 = vld [vmem:[%s6577_s1 + $0x3a4] ss:$8 sps:$4 sm:$0xff]   ;;  %v4794_v47 = vld [vmem:[%s6577_s1 + $0x434] ss:$8 sps:$4 sm:$0xff]  }
  0x64   : > { %1172 = vmatpush1.bf16.msra.mxu0 %v4729_v48  ;;  %1347 = vmatpush1.bf16.msra.mxu1 %v4732_v49  ;;  %v4789_v48 = vld [vmem:[%s6577_s1 + $0x3a0] ss:$8 sps:$4 sm:$0xff]   ;;  %v4792_v49 = vld [vmem:[%s6577_s1 + $0x430] ss:$8 sps:$4 sm:$0xff]  }
  0x65   : > { %1173 = vmatprep.subr.bf16.mxu0 %v4737_v50  ;;  %1348 = vmatprep.subr.bf16.mxu1 %v4740_v51  ;;  %v4797_v50 = vld [vmem:[%s6577_s1 + $0x3b4] ss:$8 sps:$4 sm:$0xff]   ;;  %v4800_v51 = vld [vmem:[%s6577_s1 + $0x444] ss:$8 sps:$4 sm:$0xff]  }
  0x68   : > { %1174 = vmatpush1.bf16.msra.mxu0 %v4735_v52  ;;  %1349 = vmatpush1.bf16.msra.mxu1 %v4738_v53  ;;  %v4795_v52 = vld [vmem:[%s6577_s1 + $0x3b0] ss:$8 sps:$4 sm:$0xff]   ;;  %v4798_v53 = vld [vmem:[%s6577_s1 + $0x440] ss:$8 sps:$4 sm:$0xff]  }
  0x69   : > { %1175 = vmatprep.subr.bf16.mxu0 %v4743_v54  ;;  %1350 = vmatprep.subr.bf16.mxu1 %v4746_v55  ;;  %v4803_v54 = vld [vmem:[%s6577_s1 + $0x3c4] ss:$8 sps:$4 sm:$0xff]   ;;  %v4806_v55 = vld [vmem:[%s6577_s1 + $0x454] ss:$8 sps:$4 sm:$0xff]  }
  0x6c   : > { %1176 = vmatpush1.bf16.msra.mxu0 %v4741_v56  ;;  %1351 = vmatpush1.bf16.msra.mxu1 %v4744_v57  ;;  %v4801_v56 = vld [vmem:[%s6577_s1 + $0x3c0] ss:$8 sps:$4 sm:$0xff]   ;;  %v4804_v57 = vld [vmem:[%s6577_s1 + $0x450] ss:$8 sps:$4 sm:$0xff]  }
  0x6d   : > { %1177 = vmatprep.subr.bf16.mxu0 %v4749_v58  ;;  %1352 = vmatprep.subr.bf16.mxu1 %v4752_v59  ;;  %v4809_v58 = vld [vmem:[%s6577_s1 + $0x3d4] ss:$8 sps:$4 sm:$0xff]   ;;  %v4812_v59 = vld [vmem:[%s6577_s1 + $0x464] ss:$8 sps:$4 sm:$0xff]  }
  0x70   : > { %1178 = vmatpush1.bf16.msra.mxu0 %v4747_v0  ;;  %1353 = vmatpush1.bf16.msra.mxu1 %v4750_v1  ;;  %v4807_v0 = vld [vmem:[%s6577_s1 + $0x3d0] ss:$8 sps:$4 sm:$0xff]   ;;  %v4810_v1 = vld [vmem:[%s6577_s1 + $0x460] ss:$8 sps:$4 sm:$0xff]  }
  0x71   : > { %1179 = vmatprep.subr.bf16.mxu0 %v4755_v2  ;;  %1354 = vmatprep.subr.bf16.mxu1 %v4758_v29  ;;  %v4815_v2 = vld [vmem:[%s6577_s1 + $0x3e4] ss:$8 sps:$4 sm:$0xff]   ;;  %v1585_v29 = vshll.u32 %v4121_v63, 16 }
  0x73   : > { %v1587_v7 = vrot.slane %v1585_v29, 1  ;;  %v4904_v29 = vld [vmem:[%s6579_s3 + $0xd0] ss:$8 sps:$4 sm:$0xff]  }
  0x74   : > { %1180 = vmatpush1.bf16.msra.mxu0 %v4753_v30  ;;  %1355 = vmatpush1.bf16.msra.mxu1 %v4756_v3  ;;  %v4813_v30 = vld [vmem:[%s6577_s1 + $0x3e0] ss:$8 sps:$4 sm:$0xff]   ;;  %v4816_v3 = vld [vmem:[%s6577_s1 + $0x470] ss:$8 sps:$4 sm:$0xff]  }
  0x75   : > { %1181 = vmatprep.subr.bf16.mxu0 %v4761_v6  ;;  %1356 = vmatprep.subr.bf16.mxu1 %v4764_v11  ;;  %v1583_v6 = vshrl.u32 %v4121_v63, 16  ;;  %v4825_v11 = vld [vmem:[%s6579_s3 + $0x104] ss:$8 sps:$4 sm:$0xff]   ;;  %v4895_v63 = vld [vmem:[%s6579_s3 + $0x1c0] ss:$8 sps:$4 sm:$0xff]  }
  0x77   : > { %v1588_v9 = vor.u32 %v1587_v7, %v1583_v6  ;;  %v4913_v6 = vld [vmem:[%s6579_s3 + $0x1f0] ss:$8 sps:$4 sm:$0xff]   ;;  %v4915_v7 = vld [vmem:[%s6579_s3 + $0x1f4] ss:$8 sps:$4 sm:$0xff]  }
  0x78   : > { %1182 = vmatpush1.bf16.msra.mxu0 %v4759_v13  ;;  %1357 = vmatpush1.bf16.msra.mxu1 %v4762_v14  ;;  %v4828_v13 = vld [vmem:[%s6579_s3 + $0x4] ss:$8 sps:$4 sm:$0xff]   ;;  %v4831_v14 = vld [vmem:[%s6579_s3 + $0x114] ss:$8 sps:$4 sm:$0xff]  }
  0x79   : > { %1515 = vmatprep.subr.bf16.mxu0 %v4767_v20  ;;  %1690 = vmatprep.subr.bf16.mxu1 %v4770_v21  ;;  %v4835_v20 = vld [vmem:[%s6579_s3 + $0x120] ss:$8 sps:$4 sm:$0xff]  }
  0x7a   : > { %v4838_v21 = vld [vmem:[%s6579_s3 + $0x20] ss:$8 sps:$4 sm:$0xff]  }
  0x7b   : > { %1198 = vmatmul.mubr.bf16.vlgmr.msra.gmra.mrb[8].mxu0 %v1063_v28  ;;  %1373 = vmatmul.mubr.bf16.vlgmr.msra.gmra.mrb[8].mxu1 %v1238_v31  ;;  %v4850_v28 = vld [vmem:[%s6579_s3 + $0x40] ss:$8 sps:$4 sm:$0xff]   ;;  %v4852_v31 = vld [vmem:[%s6579_s3 + $0x44] ss:$8 sps:$4 sm:$0xff]  }
  0x7c   : > { %1516 = vmatpush1.bf16.msra.mxu0 %v4765_v23  ;;  %1691 = vmatpush1.bf16.msra.mxu1 %v4768_v24  ;;  %v4841_v23 = vld [vmem:[%s6579_s3 + $0x130] ss:$8 sps:$4 sm:$0xff]   ;;  %v4846_v24 = vld [vmem:[%s6579_s3 + $0x34] ss:$8 sps:$4 sm:$0xff]  }
  0x7d   : > { %1517 = vmatprep.subr.bf16.mxu0 %v4773_v32  ;;  %1692 = vmatprep.subr.bf16.mxu1 %v4776_v33  ;;  %v4855_v32 = vld [vmem:[%s6579_s3 + $0x154] ss:$8 sps:$4 sm:$0xff]   ;;  %v4853_v33 = vld [vmem:[%s6579_s3 + $0x150] ss:$8 sps:$4 sm:$0xff]  }
  0x7e   : > { %4102 = vmatprep.mubr.msk.bf16.mxu0 %vm526_vm0, %v1420_v36  ;;  %4141 = vmatprep.mubr.msk.bf16.mxu1 %vm526_vm0, %v1595_v37  ;;  %v4861_v36 = vld [vmem:[%s6579_s3 + $0x164] ss:$8 sps:$4 sm:$0xff]  }
  0x7f   : > { %v4864_v37 = vld [vmem:[%s6579_s3 + $0x64] ss:$8 sps:$4 sm:$0xff]  }
  0x80   : > { %1518 = vmatpush1.bf16.msra.mxu0 %v4771_v34  ;;  %1693 = vmatpush1.bf16.msra.mxu1 %v4774_v35  ;;  %v4858_v34 = vld [vmem:[%s6579_s3 + $0x54] ss:$8 sps:$4 sm:$0xff]   ;;  %v4856_v35 = vld [vmem:[%s6579_s3 + $0x50] ss:$8 sps:$4 sm:$0xff]  }
  0x81   : > { %1519 = vmatprep.subr.bf16.mxu0 %v4779_v38  ;;  %1694 = vmatprep.subr.bf16.mxu1 %v4782_v39  ;;  %v4859_v38 = vld [vmem:[%s6579_s3 + $0x160] ss:$8 sps:$4 sm:$0xff]  }
  0x82   : > { %v4862_v39 = vld [vmem:[%s6579_s3 + $0x60] ss:$8 sps:$4 sm:$0xff]  }
  0x84   : > { %1520 = vmatpush1.bf16.msra.mxu0 %v4777_v40  ;;  %1695 = vmatpush1.bf16.msra.mxu1 %v4780_v41  ;;  %v4867_v40 = vld [vmem:[%s6579_s3 + $0x174] ss:$8 sps:$4 sm:$0xff]  }
  0x85   : > { %1521 = vmatprep.subr.bf16.mxu0 %v4785_v42  ;;  %1696 = vmatprep.subr.bf16.mxu1 %v4788_v43  ;;  %v4870_v41 = vld [vmem:[%s6579_s3 + $0x74] ss:$8 sps:$4 sm:$0xff]   ;;  %v4865_v42 = vld [vmem:[%s6579_s3 + $0x170] ss:$8 sps:$4 sm:$0xff]  }
  0x86   : > { %v4868_v43 = vld [vmem:[%s6579_s3 + $0x70] ss:$8 sps:$4 sm:$0xff]  }
  0x88   : > { %1522 = vmatpush1.bf16.msra.mxu0 %v4783_v44  ;;  %1697 = vmatpush1.bf16.msra.mxu1 %v4786_v45  ;;  %v4873_v44 = vld [vmem:[%s6579_s3 + $0x184] ss:$8 sps:$4 sm:$0xff]  }
  0x89   : > { %1523 = vmatprep.subr.bf16.mxu0 %v4791_v46  ;;  %1698 = vmatprep.subr.bf16.mxu1 %v4794_v47  ;;  %v4876_v45 = vld [vmem:[%s6579_s3 + $0x84] ss:$8 sps:$4 sm:$0xff]   ;;  %v4871_v46 = vld [vmem:[%s6579_s3 + $0x180] ss:$8 sps:$4 sm:$0xff]  }
  0x8a   : > { %v4874_v47 = vld [vmem:[%s6579_s3 + $0x80] ss:$8 sps:$4 sm:$0xff]  }
  0x8c   : > { %1524 = vmatpush1.bf16.msra.mxu0 %v4789_v48  ;;  %1699 = vmatpush1.bf16.msra.mxu1 %v4792_v49  ;;  %v4879_v48 = vld [vmem:[%s6579_s3 + $0x194] ss:$8 sps:$4 sm:$0xff]  }
  0x8d   : > { %1525 = vmatprep.subr.bf16.mxu0 %v4797_v50  ;;  %1700 = vmatprep.subr.bf16.mxu1 %v4800_v51  ;;  %v4882_v49 = vld [vmem:[%s6579_s3 + $0x94] ss:$8 sps:$4 sm:$0xff]   ;;  %v4877_v50 = vld [vmem:[%s6579_s3 + $0x190] ss:$8 sps:$4 sm:$0xff]  }
  0x8e   : > { %v4880_v51 = vld [vmem:[%s6579_s3 + $0x90] ss:$8 sps:$4 sm:$0xff]  }
  0x90   : > { %1526 = vmatpush1.bf16.msra.mxu0 %v4795_v52  ;;  %1701 = vmatpush1.bf16.msra.mxu1 %v4798_v53  ;;  %v4885_v52 = vld [vmem:[%s6579_s3 + $0x1a4] ss:$8 sps:$4 sm:$0xff]  }
  0x91   : > { %1527 = vmatprep.subr.bf16.mxu0 %v4803_v54  ;;  %1702 = vmatprep.subr.bf16.mxu1 %v4806_v55  ;;  %v4888_v53 = vld [vmem:[%s6579_s3 + $0xa4] ss:$8 sps:$4 sm:$0xff]   ;;  %v4883_v54 = vld [vmem:[%s6579_s3 + $0x1a0] ss:$8 sps:$4 sm:$0xff]  }
  0x92   : > { %v4886_v55 = vld [vmem:[%s6579_s3 + $0xa0] ss:$8 sps:$4 sm:$0xff]  }
  0x94   : > { %1528 = vmatpush1.bf16.msra.mxu0 %v4801_v56  ;;  %1703 = vmatpush1.bf16.msra.mxu1 %v4804_v57  ;;  %v4891_v56 = vld [vmem:[%s6579_s3 + $0x1b4] ss:$8 sps:$4 sm:$0xff]  }
  0x95   : > { %1529 = vmatprep.subr.bf16.mxu0 %v4809_v58  ;;  %1704 = vmatprep.subr.bf16.mxu1 %v4812_v59  ;;  %v4894_v57 = vld [vmem:[%s6579_s3 + $0xb4] ss:$8 sps:$4 sm:$0xff]   ;;  %v4889_v58 = vld [vmem:[%s6579_s3 + $0x1b0] ss:$8 sps:$4 sm:$0xff]  }
  0x96   : > { %v4892_v59 = vld [vmem:[%s6579_s3 + $0xb0] ss:$8 sps:$4 sm:$0xff]  }
  0x98   : > { %1530 = vmatpush1.bf16.msra.mxu0 %v4807_v0  ;;  %1705 = vmatpush1.bf16.msra.mxu1 %v4810_v1  ;;  %v4900_v0 = vld [vmem:[%s6579_s3 + $0xc4] ss:$8 sps:$4 sm:$0xff]   ;;  %v4898_v1 = vld [vmem:[%s6579_s3 + $0xc0] ss:$8 sps:$4 sm:$0xff]  }
  0x99   : > { %1531 = vmatprep.subr.bf16.mxu0 %v4815_v2  ;;  %1706 = vmatprep.subr.bf16.mxu1 %v4818_v60  ;;  %v4903_v2 = vld [vmem:[%s6579_s3 + $0x1d4] ss:$8 sps:$4 sm:$0xff]   ;;  %v4901_v60 = vld [vmem:[%s6579_s3 + $0x1d0] ss:$8 sps:$4 sm:$0xff]  }
  0x9c   : > { %1532 = vmatpush1.bf16.msra.mxu0 %v4813_v30  ;;  %1707 = vmatpush1.bf16.msra.mxu1 %v4816_v3  ;;  %v4909_v30 = vld [vmem:[%s6579_s3 + $0x1e4] ss:$8 sps:$4 sm:$0xff]   ;;  %v4907_v3 = vld [vmem:[%s6579_s3 + $0x1e0] ss:$8 sps:$4 sm:$0xff]  }
  0x9d   : > { %2024 = vmatprep.subr.bf16.mxu0 %v4825_v11  ;;  %2225 = vmatprep.subr.bf16.mxu1 %v4828_v13  ;;  %v4924_v11 = vld [vmem:[%s6579_s3 + $0x304] ss:$8 sps:$4 sm:$0xff]  }
  0x9f   : > { %1548 = vmatmul.mubr.bf16.vlgmr.msra.gmra.mrb[12].mxu0 %v1413_v8  ;;  %1723 = vmatmul.mubr.bf16.vlgmr.msra.gmra.mrb[12].mxu1 %v1588_v9  ;;  %v4916_v8 = vld [vmem:[%s6579_s3 + $0xf0] ss:$8 sps:$4 sm:$0xff]   ;;  %v4918_v9 = vld [vmem:[%s6579_s3 + $0xf4] ss:$8 sps:$4 sm:$0xff]  }
  0xa0   : > { %2025 = vmatpush1.bf16.msra.mxu0 %v4823_v10  ;;  %2226 = vmatpush1.bf16.msra.mxu1 %v4826_v12  ;;  %v4921_v10 = vld [vmem:[%s6579_s3 + $0x204] ss:$8 sps:$4 sm:$0xff]  }
  0xa1   : > { %2026 = vmatprep.subr.bf16.mxu0 %v4831_v14  ;;  %2227 = vmatprep.subr.bf16.mxu1 %v4834_v16 }
  0xa4   : > { %2027 = vmatpush1.bf16.msra.mxu0 %v4829_v15  ;;  %2228 = vmatpush1.bf16.msra.mxu1 %v4832_v17 }
  0xa5   : > { %2028 = vmatprep.subr.bf16.mxu0 %v4837_v18  ;;  %2229 = vmatprep.subr.bf16.mxu1 %v4840_v19 }
  0xa8   : > { %2029 = vmatpush1.bf16.msra.mxu0 %v4835_v20  ;;  %2230 = vmatpush1.bf16.msra.mxu1 %v4838_v21 }
  0xa9   : > { %2030 = vmatprep.subr.bf16.mxu0 %v4843_v22  ;;  %2231 = vmatprep.subr.bf16.mxu1 %v4846_v24 }
  0xac   : > { %2031 = vmatpush1.bf16.msra.mxu0 %v4841_v23  ;;  %2232 = vmatpush1.bf16.msra.mxu1 %v4844_v25 }
  0xad   : > { %2032 = vmatprep.subr.bf16.mxu0 %v4849_v26  ;;  %2233 = vmatprep.subr.bf16.mxu1 %v4852_v31 }
  0xb0   : > { %2033 = vmatpush1.bf16.msra.mxu0 %v4847_v27  ;;  %2234 = vmatpush1.bf16.msra.mxu1 %v4850_v28 }
  0xb1   : > { %2034 = vmatprep.subr.bf16.mxu0 %v4855_v32  ;;  %2235 = vmatprep.subr.bf16.mxu1 %v4858_v34 }
  0xb4   : > { %2035 = vmatpush1.bf16.msra.mxu0 %v4853_v33  ;;  %2236 = vmatpush1.bf16.msra.mxu1 %v4856_v35 }
  0xb5   : > { %2036 = vmatprep.subr.bf16.mxu0 %v4861_v36  ;;  %2237 = vmatprep.subr.bf16.mxu1 %v4864_v37 }
  0xb8   : > { %2037 = vmatpush1.bf16.msra.mxu0 %v4859_v38  ;;  %2238 = vmatpush1.bf16.msra.mxu1 %v4862_v39 }
  0xb9   : > { %2038 = vmatprep.subr.bf16.mxu0 %v4867_v40  ;;  %2239 = vmatprep.subr.bf16.mxu1 %v4870_v41 }
  0xbc   : > { %2039 = vmatpush1.bf16.msra.mxu0 %v4865_v42  ;;  %2240 = vmatpush1.bf16.msra.mxu1 %v4868_v43 }
  0xbd   : > { %2040 = vmatprep.subr.bf16.mxu0 %v4873_v44  ;;  %2241 = vmatprep.subr.bf16.mxu1 %v4876_v45 }
  0xc0   : > { %2041 = vmatpush1.bf16.msra.mxu0 %v4871_v46  ;;  %2242 = vmatpush1.bf16.msra.mxu1 %v4874_v47 }
  0xc1   : > { %2042 = vmatprep.subr.bf16.mxu0 %v4879_v48  ;;  %2243 = vmatprep.subr.bf16.mxu1 %v4882_v49  ;;  %v1735_v48 = vlaneseq }
  0xc3   : > { %v5982_v49 = vshrl.u32 %v1735_v48, 7 }
  0xc4   : > { %2043 = vmatpush1.bf16.msra.mxu0 %v4877_v50  ;;  %2244 = vmatpush1.bf16.msra.mxu1 %v4880_v51  ;;  %v1733_v51 = vld [vmem:[%s6578_s2] sm:$0x3] }
  0xc5   : > { %2044 = vmatprep.subr.bf16.mxu0 %v4885_v52  ;;  %2245 = vmatprep.subr.bf16.mxu1 %v4888_v53  ;;  %v5985_v50 = vsub.s32 0, %v5982_v49  ;;  %v5991_v52 = vsub.s32 1, %v5982_v49 }
  0xc8   : > { %2045 = vmatpush1.bf16.msra.mxu0 %v4883_v54  ;;  %2246 = vmatpush1.bf16.msra.mxu1 %v4886_v55 }
  0xc9   : > { %2046 = vmatprep.subr.bf16.mxu0 %v4891_v56  ;;  %2247 = vmatprep.subr.bf16.mxu1 %v4894_v57  ;;  %v1738_v56 = vrot.slane %v1733_v51, %v5985_v50 }
  0xcc   : > { %2047 = vmatpush1.bf16.msra.mxu0 %v4889_v58  ;;  %2248 = vmatpush1.bf16.msra.mxu1 %v4892_v59 }
  0xcd   : > { %2048 = vmatprep.subr.bf16.mxu0 %v4897_v62  ;;  %2249 = vmatprep.subr.bf16.mxu1 %v4900_v0  ;;  %v1742_v62 = vrot.slane %v1733_v51, %v5991_v52  ;;  %v4936_v51 = vld [vmem:[%s6579_s3 + $0x324] ss:$8 sps:$4 sm:$0xff]  }
  0xd0   : > { %2049 = vmatpush1.bf16.msra.mxu0 %v4895_v63  ;;  %2250 = vmatpush1.bf16.msra.mxu1 %v4898_v1 }
  0xd1   : > { %2050 = vmatprep.subr.bf16.mxu0 %v4903_v2  ;;  %2251 = vmatprep.subr.bf16.mxu1 %v4906_v61 }
  0xd4   : > { %2051 = vmatpush1.bf16.msra.mxu0 %v4901_v60  ;;  %2252 = vmatpush1.bf16.msra.mxu1 %v4904_v29 }
  0xd5   : > { %2052 = vmatprep.subr.bf16.mxu0 %v4909_v30  ;;  %2253 = vmatprep.subr.bf16.mxu1 %v4912_v4 }
  0xd8   : > { %2053 = vmatpush1.bf16.msra.mxu0 %v4907_v3  ;;  %2254 = vmatpush1.bf16.msra.mxu1 %v4910_v5 }
  0xd9   : > { %2054 = vmatprep.subr.bf16.mxu0 %v4915_v7  ;;  %2255 = vmatprep.subr.bf16.mxu1 %v4918_v9  ;;  %v4961_v7 = vld [vmem:[%s6579_s3 + $0x270] ss:$8 sps:$4 sm:$0xff]  }
  0xdc   : > { %2055 = vmatpush1.bf16.msra.mxu0 %v4913_v6  ;;  %2256 = vmatpush1.bf16.msra.mxu1 %v4916_v8 }
  0xdd   : > { %2475 = vmatprep.subr.bf16.mxu0 %v4921_v10  ;;  %2727 = vmatprep.subr.bf16.mxu1 %v4924_v11 }
 0x106   : > { %v564_v12 = vpop.f32.mrb[0].mxu0  ;;  %v704_v13 = vpop.f32.mrb[0].mxu1 }
 0x107   : > { %v705_v14 = vadd.f32 %v704_v13, %v564_v12  ;;  %v566_v15 = vpop.f32.mrb[1].mxu0  ;;  %v706_v16 = vpop.f32.mrb[1].mxu1 }
 0x108   : > { %v707_v17 = vadd.f32 %v706_v16, %v566_v15  ;;  %v568_v18 = vpop.f32.mrb[2].mxu0  ;;  %v708_v19 = vpop.f32.mrb[2].mxu1 }
 0x109   : > { %v569_v20 = vpop.f32.mrb[3].mxu0  ;;  %v709_v21 = vpop.f32.mrb[3].mxu1 }
 0x12a   : > { %v863_v22 = vpop.f32.mrb[4].mxu0  ;;  %v1024_v23 = vpop.f32.mrb[4].mxu1 }
 0x12b   : > { %v870_v24 = vadd.f32 %v863_v22, %v705_v14  ;;  %v865_v25 = vpop.f32.mrb[5].mxu0  ;;  %v1026_v26 = vpop.f32.mrb[5].mxu1 }
 0x12c   : > { %v871_v27 = vadd.f32 %v865_v25, %v707_v17  ;;  %v867_v28 = vpop.f32.mrb[6].mxu0  ;;  %v1028_v31 = vpop.f32.mrb[6].mxu1 }
 0x12d   : > { %v1031_v32 = vadd.f32 %v1024_v23, %v870_v24  ;;  %v868_v33 = vpop.f32.mrb[7].mxu0  ;;  %v1029_v34 = vpop.f32.mrb[7].mxu1  ;;  %v4919_v23 = vld [vmem:[%s6579_s3 + $0x200] ss:$8 sps:$4 sm:$0xff]  }
 0x12e   : > { %v1032_v35 = vadd.f32 %v1026_v26, %v871_v27 }
 0x14e   : > { %v1199_v36 = vpop.f32.mrb[8].mxu0  ;;  %v1374_v37 = vpop.f32.mrb[8].mxu1 }
 0x14f   : > { %v1206_v38 = vadd.f32 %v1199_v36, %v1031_v32  ;;  %v1201_v39 = vpop.f32.mrb[9].mxu0  ;;  %v1376_v40 = vpop.f32.mrb[9].mxu1  ;;  %v4922_v32 = vld [vmem:[%s6579_s3 + $0x300] ss:$8 sps:$4 sm:$0xff]  }
 0x150   : > { %v1207_v41 = vadd.f32 %v1201_v39, %v1032_v35  ;;  %v1203_v42 = vpop.f32.mrb[10].mxu0  ;;  %v1378_v43 = vpop.f32.mrb[10].mxu1 }
 0x151   : > { %v1381_v44 = vadd.f32 %v1374_v37, %v1206_v38  ;;  %v1204_v45 = vpop.f32.mrb[11].mxu0  ;;  %v1379_v46 = vpop.f32.mrb[11].mxu1  ;;  %v4927_v38 = vld [vmem:[%s6579_s3 + $0x214] ss:$8 sps:$4 sm:$0xff]  }
 0x152   : > { %v1382_v47 = vadd.f32 %v1376_v40, %v1207_v41  ;;  %v4930_v41 = vld [vmem:[%s6579_s3 + $0x314] ss:$8 sps:$4 sm:$0xff]   ;;  %v4928_v46 = vld [vmem:[%s6579_s3 + $0x310] ss:$8 sps:$4 sm:$0xff]  }
 0x172   : > { %v1549_v53 = vpop.f32.mrb[12].mxu0  ;;  %v1724_v54 = vpop.f32.mrb[12].mxu1 }
 0x173   : > { %v1556_v55 = vadd.f32 %v1549_v53, %v1381_v44  ;;  %v1551_v57 = vpop.f32.mrb[13].mxu0  ;;  %v1726_v58 = vpop.f32.mrb[13].mxu1  ;;  %v4925_v44 = vld [vmem:[%s6579_s3 + $0x210] ss:$8 sps:$4 sm:$0xff]   ;;  %v4931_v53 = vld [vmem:[%s6579_s3 + $0x220] ss:$8 sps:$4 sm:$0xff]  }
 0x174   : > { %v1557_v59 = vadd.f32 %v1551_v57, %v1382_v47  ;;  %v1553_v63 = vpop.f32.mrb[14].mxu0  ;;  %v1728_v0 = vpop.f32.mrb[14].mxu1  ;;  %v4933_v47 = vld [vmem:[%s6579_s3 + $0x224] ss:$8 sps:$4 sm:$0xff]   ;;  %v4937_v57 = vld [vmem:[%s6579_s3 + $0x230] ss:$8 sps:$4 sm:$0xff]  }
 0x175   : > { %v1731_v1 = vadd.f32 %v1724_v54, %v1556_v55  ;;  %v1554_v2 = vpop.f32.mrb[15].mxu0  ;;  %v1729_v60 = vpop.f32.mrb[15].mxu1  ;;  %v4934_v54 = vld [vmem:[%s6579_s3 + $0x320] ss:$8 sps:$4 sm:$0xff]   ;;  %v4939_v55 = vld [vmem:[%s6579_s3 + $0x234] ss:$8 sps:$4 sm:$0xff]  }
 0x176   : > { %v1732_v61 = vadd.f32 %v1726_v58, %v1557_v59  ;;  %v4940_v58 = vld [vmem:[%s6579_s3 + $0x330] ss:$8 sps:$4 sm:$0xff]   ;;  %v4945_v59 = vld [vmem:[%s6579_s3 + $0x244] ss:$8 sps:$4 sm:$0xff]   ;;  %v4943_v63 = vld [vmem:[%s6579_s3 + $0x240] ss:$8 sps:$4 sm:$0xff]  }
 0x177   : > { %v1745_v29 = vadd.f32 %v1738_v56, %v1731_v1  ;;  %v4942_v56 = vld [vmem:[%s6579_s3 + $0x334] ss:$8 sps:$4 sm:$0xff]   ;;  %v4946_v0 = vld [vmem:[%s6579_s3 + $0x340] ss:$8 sps:$4 sm:$0xff]   ;;  %v4949_v60 = vld [vmem:[%s6579_s3 + $0x250] ss:$8 sps:$4 sm:$0xff]  }
 0x178   : > { %v1746_v30 = vadd.f32 %v1742_v62, %v1732_v61  ;;  %v4948_v62 = vld [vmem:[%s6579_s3 + $0x344] ss:$8 sps:$4 sm:$0xff]   ;;  %v4951_v1 = vld [vmem:[%s6579_s3 + $0x254] ss:$8 sps:$4 sm:$0xff]   ;;  %v4952_v61 = vld [vmem:[%s6579_s3 + $0x350] ss:$8 sps:$4 sm:$0xff]  }
 0x179   : > { %v1747_v3 = vmax.f32 %v1745_v29, 0.0  ;;  %v4954_v2 = vld [vmem:[%s6579_s3 + $0x354] ss:$8 sps:$4 sm:$0xff]   ;;  %v4957_v29 = vld [vmem:[%s6579_s3 + $0x264] ss:$8 sps:$4 sm:$0xff]  }
 0x17a   : > { %v1748_v4 = vmax.f32 %v1746_v30, 0.0  ;;  %v4960_v30 = vld [vmem:[%s6579_s3 + $0x364] ss:$8 sps:$4 sm:$0xff]  }
 0x17b   : > { %v1749_v5 = vpack.c.bf16 %v1747_v3, %v1747_v3  ;;  %v4955_v3 = vld [vmem:[%s6579_s3 + $0x260] ss:$8 sps:$4 sm:$0xff]  }
 0x17c   : > { %v1750_v6 = vpack.c.bf16 %v1748_v4, %v1748_v4  ;;  %v4958_v4 = vld [vmem:[%s6579_s3 + $0x360] ss:$8 sps:$4 sm:$0xff]  }
 0x17d   : > { %v1763_v8 = vrot.slane %v1749_v5, 1  ;;  %v1811_v9 = vshrl.u32 %v1749_v5, 16  ;;  %v1752_v10 = vshll.u32 %v1749_v5, 16  ;;  %v2270_v14 = vrot.slane %v1749_v5, 2 }
 0x17e   : > { %v1764_v11 = vrot.slane %v1750_v6, 1  ;;  %v1813_v12 = vshrl.u32 %v1750_v6, 16  ;;  %v1756_v13 = vshll.u32 %v1750_v6, 16  ;;  %v2271_v26 = vrot.slane %v1750_v6, 2 }
 0x17f   : > { %v1819_v15 = vrot.slane %v1811_v9, 1  ;;  %v1821_v16 = vsel %vm5996_vm3, %v1811_v9, %v1763_v8  ;;  %v1754_v17 = vrot.slane %v1752_v10, 1  ;;  %v2266_v18 = vrot.slane %v1752_v10, 2  ;;  %v4972_v10 = vld [vmem:[%s6579_s3 + $0x384] ss:$8 sps:$4 sm:$0xff]  }
 0x180   : > { %v1820_v19 = vrot.slane %v1813_v12, 1  ;;  %v1822_v20 = vsel %vm5996_vm3, %v1813_v12, %v1764_v11  ;;  %v1758_v21 = vrot.slane %v1756_v13, 1  ;;  %v2267_v22 = vrot.slane %v1756_v13, 2  ;;  %v4975_v13 = vld [vmem:[%s6579_s3 + $0x294] ss:$8 sps:$4 sm:$0xff]  }
 0x181   : > { %v1825_v24 = vsel %vm1765_vm1, %v1821_v16, %v1819_v15  ;;  %v1768_v25 = vsel %vm5996_vm3, %v1749_v5, %v1754_v17  ;;  %v2272_v27 = vsel %vm5996_vm3, %v1763_v8, %v2266_v18  ;;  %v2523_v34 = vrot.slane %v1813_v12, 2  ;;  %v4963_v5 = vld [vmem:[%s6579_s3 + $0x274] ss:$8 sps:$4 sm:$0xff]   ;;  %v4970_v12 = vld [vmem:[%s6579_s3 + $0x380] ss:$8 sps:$4 sm:$0xff]  }
 0x182   : > { %v1829_v28 = vsel %vm1765_vm1, %v1822_v20, %v1820_v19  ;;  %v1769_v31 = vsel %vm5996_vm3, %v1750_v6, %v1758_v21  ;;  %v2273_v33 = vsel %vm5996_vm3, %v1764_v11, %v2267_v22  ;;  %v2525_v37 = vsel %vm5996_vm3, %v1820_v19, %v2271_v26  ;;  %v4966_v6 = vld [vmem:[%s6579_s3 + $0x374] ss:$8 sps:$4 sm:$0xff]   ;;  %v4976_v16 = vld [vmem:[%s6579_s3 + $0x390] ss:$8 sps:$4 sm:$0xff]   ;;  %v4981_v17 = vld [vmem:[%s6579_s3 + $0x2a4] ss:$8 sps:$4 sm:$0xff]  }
 0x183   : > { %2056 = vmatprep.mubr.bf16.mxu0 %v1829_v28  ;;  %v1777_v35 = vsel %vm1765_vm1, %v1769_v31, %v1764_v11  ;;  %v2280_v36 = vsel %vm1765_vm1, %v2273_v33, %v2271_v26  ;;  %v6028_v39 = vsel %vm1765_vm1, %v2272_v27, %v2270_v14  ;;  %v1773_v40 = vsel %vm1765_vm1, %v1768_v25, %v1763_v8  ;;  %v4964_v8 = vld [vmem:[%s6579_s3 + $0x370] ss:$8 sps:$4 sm:$0xff]   ;;  %v4967_v11 = vld [vmem:[%s6579_s3 + $0x280] ss:$8 sps:$4 sm:$0xff]   ;;  %v4984_v18 = vld [vmem:[%s6579_s3 + $0x3a4] ss:$8 sps:$4 sm:$0xff]  }
 0x184   : > { %2057 = vmatmul.mubr.bf16.vlgmr.msra.gmra.mrb[16].mxu0 %v1825_v24  ;;  %2257 = vmatprep.mubr.bf16.mxu1 %v1777_v35  ;;  %v2522_v42 = vrot.slane %v1811_v9, 2  ;;  %v2524_v43 = vsel %vm5996_vm3, %v1819_v15, %v2270_v14  ;;  %v2532_v45 = vsel %vm1765_vm1, %v2525_v37, %v2523_v34  ;;  %v4969_v9 = vld [vmem:[%s6579_s3 + $0x284] ss:$8 sps:$4 sm:$0xff]   ;;  %v4978_v14 = vld [vmem:[%s6579_s3 + $0x394] ss:$8 sps:$4 sm:$0xff]  }
 0x185   : > { %2476 = vmatpush1.bf16.msra.mxu0 %v4919_v23  ;;  %2258 = vmatmul.mubr.bf16.vlgmr.msra.gmra.mrb[16].mxu1 %v1773_v40  ;;  %v4973_v15 = vld [vmem:[%s6579_s3 + $0x290] ss:$8 sps:$4 sm:$0xff]   ;;  %v4979_v19 = vld [vmem:[%s6579_s3 + $0x2a0] ss:$8 sps:$4 sm:$0xff]   ;;  %v4987_v21 = vld [vmem:[%s6579_s3 + $0x2b4] ss:$8 sps:$4 sm:$0xff]  }
 0x186   : > { %2507 = vmatprep.mubr.bf16.mxu0 %v2280_v36  ;;  %2728 = vmatpush1.bf16.msra.mxu1 %v4922_v32  ;;  %v6047_v48 = vsel %vm1765_vm1, %v2524_v43, %v2522_v42  ;;  %v4982_v20 = vld [vmem:[%s6579_s3 + $0x3a0] ss:$8 sps:$4 sm:$0xff]   ;;  %v4990_v22 = vld [vmem:[%s6579_s3 + $0x3b4] ss:$8 sps:$4 sm:$0xff]   ;;  %v4985_v23 = vld [vmem:[%s6579_s3 + $0x2b0] ss:$8 sps:$4 sm:$0xff]  }
 0x187   : > { %2759 = vmatprep.mubr.bf16.mxu1 %v2532_v45  ;;  %2477 = vmatprep.subr.bf16.mxu0 %v4927_v38  ;;  %v4988_v24 = vld [vmem:[%s6579_s3 + $0x3b0] ss:$8 sps:$4 sm:$0xff]   ;;  %v4993_v25 = vld [vmem:[%s6579_s3 + $0x2c4] ss:$8 sps:$4 sm:$0xff]   ;;  %v4991_v27 = vld [vmem:[%s6579_s3 + $0x2c0] ss:$8 sps:$4 sm:$0xff]  }
 0x188   : > { %2729 = vmatprep.subr.bf16.mxu1 %v4930_v41  ;;  %v4996_v26 = vld [vmem:[%s6579_s3 + $0x3c4] ss:$8 sps:$4 sm:$0xff]   ;;  %v4994_v28 = vld [vmem:[%s6579_s3 + $0x3c0] ss:$8 sps:$4 sm:$0xff]   ;;  %v4999_v31 = vld [vmem:[%s6579_s3 + $0x2d4] ss:$8 sps:$4 sm:$0xff]  }
 0x189   : > { %2478 = vmatpush1.bf16.msra.mxu0 %v4925_v44  ;;  %v5002_v32 = vld [vmem:[%s6579_s3 + $0x3d4] ss:$8 sps:$4 sm:$0xff]   ;;  %v4997_v33 = vld [vmem:[%s6579_s3 + $0x2d0] ss:$8 sps:$4 sm:$0xff]   ;;  %v5005_v35 = vld [vmem:[%s6579_s3 + $0x2e4] ss:$8 sps:$4 sm:$0xff]  }
 0x18a   : > { %2730 = vmatpush1.bf16.msra.mxu1 %v4928_v46  ;;  %2479 = vmatprep.subr.bf16.mxu0 %v4933_v47  ;;  %v5000_v34 = vld [vmem:[%s6579_s3 + $0x3d0] ss:$8 sps:$4 sm:$0xff]   ;;  %v5008_v36 = vld [vmem:[%s6579_s3 + $0x3e4] ss:$8 sps:$4 sm:$0xff]   ;;  %v5003_v37 = vld [vmem:[%s6579_s3 + $0x2e0] ss:$8 sps:$4 sm:$0xff]  }
 0x18b   : > { %2731 = vmatprep.subr.bf16.mxu1 %v4936_v51  ;;  %v5006_v38 = vld [vmem:[%s6579_s3 + $0x3e0] ss:$8 sps:$4 sm:$0xff]   ;;  %v5011_v40 = vld [vmem:[%s6579_s3 + $0x2f4] ss:$8 sps:$4 sm:$0xff]   ;;  %v5009_v42 = vld [vmem:[%s6579_s3 + $0x2f0] ss:$8 sps:$4 sm:$0xff]  }
 0x18c   : > { %v5014_v41 = vld [vmem:[%s6579_s3 + $0x3f4] ss:$8 sps:$4 sm:$0xff]   ;;  %v5012_v43 = vld [vmem:[%s6579_s3 + $0x3f0] ss:$8 sps:$4 sm:$0xff]   ;;  %v5015_v44 = vld [vmem:[%s6581_s5] sm:$0xff]   ;;  %v5171_v46 = vmov 0  }
 0x18d   : > { %2480 = vmatpush1.bf16.msra.mxu0 %v4931_v53  ;;  %v5016_v45 = vld [vmem:[%s6581_s5 + $0x60] sm:$0xff]   ;;  %v5018_v47 = vld [vmem:[%s6581_s5 + $0x68] sm:$0xff]   ;;  %v5020_v51 = vld [vmem:[%s6581_s5 + $0x70] sm:$0xff]  }
 0x18e   : > { %2732 = vmatpush1.bf16.msra.mxu1 %v4934_v54  ;;  %2481 = vmatprep.subr.bf16.mxu0 %v4939_v55  ;;  %v5021_v53 = vld [vmem:[%s6581_s5 + $0x18] sm:$0xff]   ;;  %v5023_v55 = vld [vmem:[%s6581_s5 + $0x20] sm:$0xff]  }
 0x18f   : > { %2733 = vmatprep.subr.bf16.mxu1 %v4942_v56  ;;  %v5022_v54 = vld [vmem:[%s6581_s5 + $0x78] sm:$0xff]   ;;  %v5024_v56 = vld [vmem:[%s6581_s5 + $0x80] sm:$0xff]  }
 0x191   : > { %2482 = vmatpush1.bf16.msra.mxu0 %v4937_v57  ;;  %v5025_v57 = vld [vmem:[%s6581_s5 + $0x28] sm:$0xff]  }
 0x192   : > { %2734 = vmatpush1.bf16.msra.mxu1 %v4940_v58  ;;  %2483 = vmatprep.subr.bf16.mxu0 %v4945_v59  ;;  %v5026_v58 = vld [vmem:[%s6581_s5 + $0x88] sm:$0xff]   ;;  %v5027_v59 = vld [vmem:[%s6581_s5 + $0x30] sm:$0xff]  }
 0x193   : > { %2735 = vmatprep.subr.bf16.mxu1 %v4948_v62  ;;  %v5028_v62 = vld [vmem:[%s6581_s5 + $0x90] sm:$0xff]  }
 0x195   : > { %2484 = vmatpush1.bf16.msra.mxu0 %v4943_v63  ;;  %v5029_v63 = vld [vmem:[%s6581_s5 + $0x38] sm:$0xff]  }
 0x196   : > { %2736 = vmatpush1.bf16.msra.mxu1 %v4946_v0  ;;  %2485 = vmatprep.subr.bf16.mxu0 %v4951_v1  ;;  %v5030_v0 = vld [vmem:[%s6581_s5 + $0x98] sm:$0xff]   ;;  %v5031_v1 = vld [vmem:[%s6581_s5 + $0x40] sm:$0xff]  }
 0x197   : > { %2737 = vmatprep.subr.bf16.mxu1 %v4954_v2  ;;  %v5032_v2 = vld [vmem:[%s6581_s5 + $0xa0] sm:$0xff]  }
 0x199   : > { %2486 = vmatpush1.bf16.msra.mxu0 %v4949_v60  ;;  %v5033_v60 = vld [vmem:[%s6581_s5 + $0x48] sm:$0xff]  }
 0x19a   : > { %2738 = vmatpush1.bf16.msra.mxu1 %v4952_v61  ;;  %2487 = vmatprep.subr.bf16.mxu0 %v4957_v29  ;;  %v5034_v61 = vld [vmem:[%s6581_s5 + $0xa8] sm:$0xff]   ;;  %v5035_v29 = vld [vmem:[%s6581_s5 + $0x50] sm:$0xff]  }
 0x19b   : > { %2739 = vmatprep.subr.bf16.mxu1 %v4960_v30  ;;  %v5036_v30 = vld [vmem:[%s6581_s5 + $0xb0] sm:$0xff]  }
 0x19d   : > { %2488 = vmatpush1.bf16.msra.mxu0 %v4955_v3  ;;  %v5037_v3 = vld [vmem:[%s6581_s5 + $0x58] sm:$0xff]  }
 0x19e   : > { %2740 = vmatpush1.bf16.msra.mxu1 %v4958_v4  ;;  %2489 = vmatprep.subr.bf16.mxu0 %v4963_v5  ;;  %v5038_v4 = vld [vmem:[%s6581_s5 + $0xb8] sm:$0xff]  }
 0x19f   : > { %2741 = vmatprep.subr.bf16.mxu1 %v4966_v6 }
 0x1a1   : > { %2490 = vmatpush1.bf16.msra.mxu0 %v4961_v7 }
 0x1a2   : > { %2742 = vmatpush1.bf16.msra.mxu1 %v4964_v8  ;;  %2491 = vmatprep.subr.bf16.mxu0 %v4969_v9 }
 0x1a3   : > { %2743 = vmatprep.subr.bf16.mxu1 %v4972_v10 }
 0x1a5   : > { %2492 = vmatpush1.bf16.msra.mxu0 %v4967_v11 }
 0x1a6   : > { %2744 = vmatpush1.bf16.msra.mxu1 %v4970_v12  ;;  %2493 = vmatprep.subr.bf16.mxu0 %v4975_v13 }
 0x1a7   : > { %2745 = vmatprep.subr.bf16.mxu1 %v4978_v14 }
 0x1a9   : > { %2494 = vmatpush1.bf16.msra.mxu0 %v4973_v15  ;;  %v2770_v15 = vld [vmem:[%s6580_s4] sm:$0x3] }
 0x1aa   : > { %2746 = vmatpush1.bf16.msra.mxu1 %v4976_v16  ;;  %2495 = vmatprep.subr.bf16.mxu0 %v4981_v17 }
 0x1ab   : > { %2747 = vmatprep.subr.bf16.mxu1 %v4984_v18 }
 0x1ad   : > { %2496 = vmatpush1.bf16.msra.mxu0 %v4979_v19 }
 0x1ae   : > { %2748 = vmatpush1.bf16.msra.mxu1 %v4982_v20  ;;  %2497 = vmatprep.subr.bf16.mxu0 %v4987_v21  ;;  %v2775_v20 = vrot.slane %v2770_v15, %v5985_v50 }
 0x1af   : > { %2749 = vmatprep.subr.bf16.mxu1 %v4990_v22 }
 0x1b1   : > { %2498 = vmatpush1.bf16.msra.mxu0 %v4985_v23 }
 0x1b2   : > { %2750 = vmatpush1.bf16.msra.mxu1 %v4988_v24  ;;  %2499 = vmatprep.subr.bf16.mxu0 %v4993_v25  ;;  %v2779_v24 = vrot.slane %v2770_v15, %v5991_v52  ;;  %v3220_v15 = vld [vmem:[%s6582_s6] sm:$0x1] }
 0x1b3   : > { %2751 = vmatprep.subr.bf16.mxu1 %v4996_v26 }
 0x1b5   : > { %2500 = vmatpush1.bf16.msra.mxu0 %v4991_v27 }
 0x1b6   : > { %2752 = vmatpush1.bf16.msra.mxu1 %v4994_v28  ;;  %2501 = vmatprep.subr.bf16.mxu0 %v4999_v31 }
 0x1b7   : > { %2753 = vmatprep.subr.bf16.mxu1 %v5002_v32 }
 0x1b9   : > { %2502 = vmatpush1.bf16.msra.mxu0 %v4997_v33 }
 0x1ba   : > { %2754 = vmatpush1.bf16.msra.mxu1 %v5000_v34  ;;  %2503 = vmatprep.subr.bf16.mxu0 %v5005_v35 }
 0x1bb   : > { %2755 = vmatprep.subr.bf16.mxu1 %v5008_v36 }
 0x1bd   : > { %2504 = vmatpush1.bf16.msra.mxu0 %v5003_v37 }
 0x1be   : > { %2756 = vmatpush1.bf16.msra.mxu1 %v5006_v38  ;;  %2505 = vmatprep.subr.bf16.mxu0 %v5011_v40  ;;  %v5039_v40 = vld [vmem:[%s6581_s5 + $0xc0] sm:$0xff]  }
 0x1bf   : > { %2757 = vmatprep.subr.bf16.mxu1 %v5014_v41 }
 0x1c1   : > { %2506 = vmatpush1.bf16.msra.mxu0 %v5009_v42 }
 0x1c2   : > { %2758 = vmatpush1.bf16.msra.mxu1 %v5012_v43  ;;  %2920 = vmatprep.subr.bf16.mxu0 %v5171_v46  ;;  %v5040_v43 = vld [vmem:[%s6581_s5 + $0xc8] sm:$0xff]  }
 0x1c3   : > { %3034 = vmatprep.subr.bf16.mxu1 %v5171_v46 }
 0x1c4   : > { %2508 = vmatmul.mubr.bf16.vlgmr.msra.gmra.mrb[20].mxu0 %v6028_v39  ;;  %v5017_v39 = vld [vmem:[%s6581_s5 + $0x8] sm:$0xff]  }
 0x1c5   : > { %2760 = vmatmul.mubr.bf16.vlgmr.msra.gmra.mrb[20].mxu1 %v6047_v48  ;;  %2921 = vmatpush1.bf16.msra.mxu0 %v5016_v45  ;;  %v5019_v48 = vld [vmem:[%s6581_s5 + $0x10] sm:$0xff]   ;;  %v5042_v45 = vld [vmem:[%s6581_s5 + $0xd8] sm:$0xff]  }
 0x1c6   : > { %3035 = vmatpush1.bf16.msra.mxu1 %v5015_v44  ;;  %2922 = vmatprep.subr.bf16.mxu0 %v5171_v46  ;;  %v5041_v44 = vld [vmem:[%s6581_s5 + $0xd0] sm:$0xff]  }
 0x1c7   : > { %3036 = vmatprep.subr.bf16.mxu1 %v5171_v46 }
 0x1c9   : > { %2923 = vmatpush1.bf16.msra.mxu0 %v5018_v47  ;;  %v5044_v47 = vld [vmem:[%s6581_s5 + $0xe8] sm:$0xff]  }
 0x1ca   : > { %3037 = vmatpush1.bf16.msra.mxu1 %v5017_v39  ;;  %2924 = vmatprep.subr.bf16.mxu0 %v5171_v46  ;;  %v5043_v39 = vld [vmem:[%s6581_s5 + $0xe0] sm:$0xff]  }
 0x1cb   : > { %3038 = vmatprep.subr.bf16.mxu1 %v5171_v46 }
 0x1cd   : > { %2925 = vmatpush1.bf16.msra.mxu0 %v5020_v51  ;;  %v5046_v51 = vld [vmem:[%s6581_s5 + $0xf8] sm:$0xff]  }
 0x1ce   : > { %3039 = vmatpush1.bf16.msra.mxu1 %v5019_v48  ;;  %2926 = vmatprep.subr.bf16.mxu0 %v5171_v46  ;;  %v5045_v48 = vld [vmem:[%s6581_s5 + $0xf0] sm:$0xff]  }
 0x1cf   : > { %3040 = vmatprep.subr.bf16.mxu1 %v5171_v46 }
 0x1d1   : > { %2927 = vmatpush1.bf16.msra.mxu0 %v5022_v54  ;;  %v5048_v54 = vld [vmem:[%s6581_s5 + $0x108] sm:$0xff]  }
 0x1d2   : > { %3041 = vmatpush1.bf16.msra.mxu1 %v5021_v53  ;;  %2928 = vmatprep.subr.bf16.mxu0 %v5171_v46  ;;  %v5047_v53 = vld [vmem:[%s6581_s5 + $0x100] sm:$0xff]  }
 0x1d3   : > { %3042 = vmatprep.subr.bf16.mxu1 %v5171_v46 }
 0x1d5   : > { %2929 = vmatpush1.bf16.msra.mxu0 %v5024_v56  ;;  %v5050_v56 = vld [vmem:[%s6581_s5 + $0x118] sm:$0xff]  }
 0x1d6   : > { %3043 = vmatpush1.bf16.msra.mxu1 %v5023_v55  ;;  %2930 = vmatprep.subr.bf16.mxu0 %v5171_v46  ;;  %v5049_v55 = vld [vmem:[%s6581_s5 + $0x110] sm:$0xff]  }
 0x1d7   : > { %3044 = vmatprep.subr.bf16.mxu1 %v5171_v46 }
 0x1d9   : > { %2931 = vmatpush1.bf16.msra.mxu0 %v5026_v58  ;;  %v5051_v58 = vld [vmem:[%s6583_s7] ss:$16 sps:$4 sm:$0xff]  }
 0x1da   : > { %3045 = vmatpush1.bf16.msra.mxu1 %v5025_v57  ;;  %2932 = vmatprep.subr.bf16.mxu0 %v5171_v46 }
 0x1db   : > { %3046 = vmatprep.subr.bf16.mxu1 %v5171_v46 }
 0x1dd   : > { %2933 = vmatpush1.bf16.msra.mxu0 %v5028_v62  ;;  %v5056_v62 = vld [vmem:[%s6583_s7 + $0x24] ss:$16 sps:$4 sm:$0xff]  }
 0x1de   : > { %3047 = vmatpush1.bf16.msra.mxu1 %v5027_v59  ;;  %2934 = vmatprep.subr.bf16.mxu0 %v5171_v46  ;;  %v5053_v59 = vld [vmem:[%s6583_s7 + $0x4] ss:$16 sps:$4 sm:$0xff]  }
 0x1df   : > { %3048 = vmatprep.subr.bf16.mxu1 %v5171_v46 }
 0x1e1   : > { %2935 = vmatpush1.bf16.msra.mxu0 %v5030_v0  ;;  %v5059_v0 = vld [vmem:[%s6583_s7 + $0x44] ss:$16 sps:$4 sm:$0xff]  }
 0x1e2   : > { %3049 = vmatpush1.bf16.msra.mxu1 %v5029_v63  ;;  %2936 = vmatprep.subr.bf16.mxu0 %v5171_v46  ;;  %v5054_v63 = vld [vmem:[%s6583_s7 + $0x20] ss:$16 sps:$4 sm:$0xff]  }
 0x1e3   : > { %3050 = vmatprep.subr.bf16.mxu1 %v5171_v46 }
 0x1e5   : > { %2937 = vmatpush1.bf16.msra.mxu0 %v5032_v2  ;;  %v5062_v2 = vld [vmem:[%s6583_s7 + $0x64] ss:$16 sps:$4 sm:$0xff]  }
 0x1e6   : > { %3051 = vmatpush1.bf16.msra.mxu1 %v5031_v1  ;;  %2938 = vmatprep.subr.bf16.mxu0 %v5171_v46  ;;  %v5057_v1 = vld [vmem:[%s6583_s7 + $0x40] ss:$16 sps:$4 sm:$0xff]  }
 0x1e7   : > { %3052 = vmatprep.subr.bf16.mxu1 %v5171_v46 }
 0x1e9   : > { %2939 = vmatpush1.bf16.msra.mxu0 %v5034_v61  ;;  %v5065_v61 = vld [vmem:[%s6583_s7 + $0xc] ss:$16 sps:$4 sm:$0xff]  }
 0x1ea   : > { %3053 = vmatpush1.bf16.msra.mxu1 %v5033_v60  ;;  %2940 = vmatprep.subr.bf16.mxu0 %v5171_v46  ;;  %v5060_v60 = vld [vmem:[%s6583_s7 + $0x60] ss:$16 sps:$4 sm:$0xff]  }
 0x1eb   : > { %3054 = vmatprep.subr.bf16.mxu1 %v5171_v46 }
 0x1ed   : > { %2941 = vmatpush1.bf16.msra.mxu0 %v5036_v30  ;;  %v5085_v30 = vld [vmem:[%s6585_s9 + $0x80] sm:$0xff]  }
 0x1ee   : > { %3055 = vmatpush1.bf16.msra.mxu1 %v5035_v29  ;;  %2942 = vmatprep.subr.bf16.mxu0 %v5171_v46  ;;  %v5083_v29 = vld [vmem:[%s6585_s9 + $0xc0] sm:$0xff]  }
 0x1ef   : > { %3056 = vmatprep.subr.bf16.mxu1 %v5171_v46 }
 0x1f1   : > { %2943 = vmatpush1.bf16.msra.mxu0 %v5038_v4  ;;  %v5089_v4 = vld [vmem:[%s6585_s9 + $0x88] sm:$0xff]  }
 0x1f2   : > { %3057 = vmatpush1.bf16.msra.mxu1 %v5037_v3  ;;  %3179 = vmatprep.subr.bf16.mxu0 %v5171_v46  ;;  %v5087_v3 = vld [vmem:[%s6585_s9 + $0xc8] sm:$0xff]  }
 0x1f3   : > { %3345 = vmatprep.subr.bf16.mxu1 %v5053_v59  ;;  %v5103_v59 = vld [vmem:[%s6585_s9 + $0xf0] sm:$0xff]  }
 0x257   : > { %v2058_v5 = vpop.f32.mrb[16].mxu0 }
 0x258   : > { %v2060_v6 = vpop.f32.mrb[17].mxu0  ;;  %v2259_v7 = vpop.f32.mrb[16].mxu1 }
 0x259   : > { %v2260_v8 = vadd.f32 %v2259_v7, %v2058_v5  ;;  %v2062_v9 = vpop.f32.mrb[18].mxu0  ;;  %v2261_v10 = vpop.f32.mrb[17].mxu1 }
 0x25a   : > { %v2262_v11 = vadd.f32 %v2261_v10, %v2060_v6  ;;  %v2063_v12 = vpop.f32.mrb[19].mxu0  ;;  %v2263_v13 = vpop.f32.mrb[18].mxu1 }
 0x25b   : > { %v2264_v14 = vpop.f32.mrb[19].mxu1 }
 0x297   : > { %v2509_v16 = vpop.f32.mrb[20].mxu0 }
 0x298   : > { %v2516_v17 = vadd.f32 %v2509_v16, %v2260_v8  ;;  %v2511_v18 = vpop.f32.mrb[21].mxu0  ;;  %v2761_v19 = vpop.f32.mrb[20].mxu1 }
 0x299   : > { %v2517_v21 = vadd.f32 %v2511_v18, %v2262_v11  ;;  %v2513_v22 = vpop.f32.mrb[22].mxu0  ;;  %v2763_v23 = vpop.f32.mrb[21].mxu1 }
 0x29a   : > { %v2768_v25 = vadd.f32 %v2761_v19, %v2516_v17  ;;  %v2514_v26 = vpop.f32.mrb[23].mxu0  ;;  %v2765_v27 = vpop.f32.mrb[22].mxu1  ;;  %v5063_v22 = vld [vmem:[%s6583_s7 + $0x8] ss:$16 sps:$4 sm:$0xff]  }
 0x29b   : > { %v2769_v28 = vadd.f32 %v2763_v23, %v2517_v21  ;;  %v2766_v31 = vpop.f32.mrb[23].mxu1  ;;  %v5071_v26 = vld [vmem:[%s6583_s7 + $0x4c] ss:$16 sps:$4 sm:$0xff]   ;;  %v5069_v27 = vld [vmem:[%s6583_s7 + $0x48] ss:$16 sps:$4 sm:$0xff]  }
 0x29c   : > { %v2782_v32 = vadd.f32 %v2775_v20, %v2768_v25  ;;  %v5066_v25 = vld [vmem:[%s6583_s7 + $0x28] ss:$16 sps:$4 sm:$0xff]   ;;  %v5075_v31 = vld [vmem:[%s6585_s9 + $0x40] sm:$0xff]  }
 0x29d   : > { %v2783_v33 = vadd.f32 %v2779_v24, %v2769_v28  ;;  %v5068_v24 = vld [vmem:[%s6583_s7 + $0x2c] ss:$16 sps:$4 sm:$0xff]  }
 0x29e   : > { %v2784_v34 = vmax.f32 %v2782_v32, 0.0  ;;  %v5074_v28 = vld [vmem:[%s6583_s7 + $0x6c] ss:$16 sps:$4 sm:$0xff]   ;;  %v5076_v32 = vld [vmem:[%s6585_s9] sm:$0xff]  }
 0x29f   : > { %v2785_v35 = vmax.f32 %v2783_v33, 0.0  ;;  %v5077_v33 = vld [vmem:[%s6585_s9 + $0x48] sm:$0xff]  }
 0x2a0   : > { %v2786_v36 = vpack.c.bf16 %v2784_v34, %v2784_v34  ;;  %v5078_v34 = vld [vmem:[%s6585_s9 + $0x8] sm:$0xff]  }
 0x2a1   : > { %v2787_v37 = vpack.c.bf16 %v2785_v35, %v2785_v35  ;;  %v5079_v35 = vld [vmem:[%s6585_s9 + $0x50] sm:$0xff]  }
 0x2a2   : > { %v2838_v41 = vshrl.u32 %v2786_v36, 16  ;;  %v3101_v57 = vrot.slane %v2786_v36, 1 }
 0x2a3   : > { %4415 = vmatprep.mubr.msk.bf16.mxu1 %vm2916_vm4, %v2787_v37  ;;  %v2841_v38 = vshrl.u32 %v2787_v37, 16  ;;  %v3102_v42 = vrot.slane %v2787_v37, 1  ;;  %v5081_v37 = vld [vmem:[%s6585_s9 + $0x58] sm:$0xff]  }
 0x2a4   : > { %3067 = vmatmul.mubr.bf16.vlgmr.msra.gmra.mrb[24].mxu1 %v2786_v36  ;;  %v5080_v36 = vld [vmem:[%s6585_s9 + $0x10] sm:$0xff]  }
 0x2a5   : > { %4402 = vmatprep.mubr.msk.bf16.mxu0 %vm2916_vm4, %v2841_v38  ;;  %3377 = vmatprep.mubr.bf16.mxu1 %v5171_v46  ;;  %v5082_v38 = vld [vmem:[%s6585_s9 + $0x18] sm:$0xff]  }
 0x2a6   : > { %2953 = vmatmul.mubr.bf16.vlgmr.msra.gmra.mrb[24].mxu0 %v2838_v41  ;;  %3346 = vmatpush1.bf16.msra.mxu1 %v5051_v58  ;;  %v5086_v41 = vld [vmem:[%s6585_s9 + $0x20] sm:$0xff]   ;;  %v5102_v58 = vld [vmem:[%s6585_s9 + $0xa8] sm:$0xff]  }
 0x2a7   : > { %3180 = vmatpush1.bf16.msra.mxu0 %v5039_v40  ;;  %4452 = vmatprep.mubr.msk.bf16.mxu0 %vm2916_vm4, %v3102_v42  ;;  %v5084_v40 = vld [vmem:[%s6585_s9 + $0x60] sm:$0xff]   ;;  %v5088_v42 = vld [vmem:[%s6585_s9 + $0x68] sm:$0xff]  }
 0x2a8   : > { %3181 = vmatprep.subr.bf16.mxu0 %v5171_v46  ;;  %3347 = vmatprep.subr.bf16.mxu1 %v5056_v62  ;;  %v5104_v62 = vld [vmem:[%s6585_s9 + $0xb0] sm:$0xff]  }
 0x2aa   : > { %3348 = vmatpush1.bf16.msra.mxu1 %v5054_v63  ;;  %v5105_v63 = vld [vmem:[%s6585_s9 + $0xf8] sm:$0xff]  }
 0x2ab   : > { %3182 = vmatpush1.bf16.msra.mxu0 %v5040_v43  ;;  %3349 = vmatprep.subr.bf16.mxu1 %v5059_v0  ;;  %v5090_v43 = vld [vmem:[%s6585_s9 + $0x28] sm:$0xff]   ;;  %v5106_v0 = vld [vmem:[%s6585_s9 + $0xb8] sm:$0xff]  }
 0x2ac   : > { %3183 = vmatprep.subr.bf16.mxu0 %v5171_v46 }
 0x2ae   : > { %3350 = vmatpush1.bf16.msra.mxu1 %v5057_v1  ;;  %v3240_v1 = vld [vmem:[%s6584_s8] sm:$0xf] }
 0x2af   : > { %3184 = vmatpush1.bf16.msra.mxu0 %v5041_v44  ;;  %3351 = vmatprep.subr.bf16.mxu1 %v5062_v2  ;;  %v5091_v44 = vld [vmem:[%s6585_s9 + $0xd0] sm:$0xff]   ;;  %v3325_v2 = vrot.slane %v3240_v1, %v5985_v50 }
 0x2b0   : > { %3185 = vmatprep.subr.bf16.mxu0 %v5171_v46 }
 0x2b2   : > { %3352 = vmatpush1.bf16.msra.mxu1 %v5060_v60  ;;  %v3329_v60 = vrot.slane %v3240_v1, %v5991_v52 }
 0x2b3   : > { %3186 = vmatpush1.bf16.msra.mxu0 %v5042_v45  ;;  %3386 = vmatprep.subr.bf16.mxu1 %v5065_v61  ;;  %v5092_v45 = vld [vmem:[%s6585_s9 + $0x70] sm:$0xff]  }
 0x2b4   : > { %3187 = vmatprep.subr.bf16.mxu0 %v5171_v46 }
 0x2b7   : > { %3188 = vmatpush1.bf16.msra.mxu0 %v5043_v39  ;;  %v5093_v39 = vld [vmem:[%s6585_s9 + $0x90] sm:$0xff]  }
 0x2b8   : > { %3189 = vmatprep.subr.bf16.mxu0 %v5171_v46 }
 0x2bb   : > { %3190 = vmatpush1.bf16.msra.mxu0 %v5044_v47  ;;  %v5094_v47 = vld [vmem:[%s6585_s9 + $0x30] sm:$0xff]  }
 0x2bc   : > { %3191 = vmatprep.subr.bf16.mxu0 %v5171_v46 }
 0x2bf   : > { %3192 = vmatpush1.bf16.msra.mxu0 %v5045_v48  ;;  %v5095_v48 = vld [vmem:[%s6585_s9 + $0xd8] sm:$0xff]  }
 0x2c0   : > { %3193 = vmatprep.subr.bf16.mxu0 %v5171_v46 }
 0x2c3   : > { %3194 = vmatpush1.bf16.msra.mxu0 %v5046_v51  ;;  %v5096_v51 = vld [vmem:[%s6585_s9 + $0x78] sm:$0xff]  }
 0x2c4   : > { %3195 = vmatprep.subr.bf16.mxu0 %v5171_v46 }
 0x2c7   : > { %3196 = vmatpush1.bf16.msra.mxu0 %v5047_v53  ;;  %v5097_v53 = vld [vmem:[%s6585_s9 + $0x98] sm:$0xff]  }
 0x2c8   : > { %3197 = vmatprep.subr.bf16.mxu0 %v5171_v46 }
 0x2cb   : > { %3198 = vmatpush1.bf16.msra.mxu0 %v5048_v54  ;;  %v5098_v54 = vld [vmem:[%s6585_s9 + $0x38] sm:$0xff]  }
 0x2cc   : > { %3199 = vmatprep.subr.bf16.mxu0 %v5171_v46 }
 0x2cf   : > { %3200 = vmatpush1.bf16.msra.mxu0 %v5049_v55  ;;  %v5099_v55 = vld [vmem:[%s6585_s9 + $0xe0] sm:$0xff]  }
 0x2d0   : > { %3201 = vmatprep.subr.bf16.mxu0 %v5171_v46 }
 0x2d3   : > { %3202 = vmatpush1.bf16.msra.mxu0 %v5050_v56  ;;  %v5100_v56 = vld [vmem:[%s6585_s9 + $0xa0] sm:$0xff]  }
 0x2d4   : > { %4529 = vmatprep.subr.bf16.mxu0 %v5083_v29 }
 0x2d6   : > { %3212 = vmatmul.mubr.bf16.vlgmr.msra.gmra.mrb[28].mxu0 %v3101_v57  ;;  %v5101_v57 = vld [vmem:[%s6585_s9 + $0xe8] sm:$0xff]  }
 0x2d7   : > { %4530 = vmatpush3.bf16.msra.mxu0 %v5085_v30 }
 0x2d8   : > { %4531 = vmatprep.subr.bf16.mxu0 %v5087_v3 }
 0x2db   : > { %4532 = vmatpush3.bf16.msra.mxu0 %v5089_v4 }
 0x2dc   : > { %4533 = vmatprep.subr.bf16.mxu0 %v5091_v44 }
 0x2df   : > { %4534 = vmatpush3.bf16.msra.mxu0 %v5093_v39 }
 0x2e0   : > { %4535 = vmatprep.subr.bf16.mxu0 %v5095_v48 }
 0x2e3   : > { %4536 = vmatpush3.bf16.msra.mxu0 %v5097_v53 }
 0x2e4   : > { %4537 = vmatprep.subr.bf16.mxu0 %v5099_v55 }
 0x2e7   : > { %4538 = vmatpush3.bf16.msra.mxu0 %v5100_v56 }
 0x2e8   : > { %4539 = vmatprep.subr.bf16.mxu0 %v5101_v57 }
 0x2eb   : > { %4540 = vmatpush3.bf16.msra.mxu0 %v5102_v58 }
 0x2ec   : > { %4541 = vmatprep.subr.bf16.mxu0 %v5103_v59 }
 0x2ef   : > { %4542 = vmatpush3.bf16.msra.mxu0 %v5104_v62 }
 0x2f0   : > { %4543 = vmatprep.subr.bf16.mxu0 %v5105_v63 }
 0x2f3   : > { %4544 = vmatpush3.bf16.msra.mxu0 %v5106_v0 }
 0x377   : > { %v3068_v5 = vpop.f32.mrb[24].mxu1 }
 0x378   : > { %v3070_v6 = vpop.f32.mrb[25].mxu1 }
 0x379   : > { %v2954_v7 = vpop.f32.mrb[24].mxu0  ;;  %v3071_v8 = vpop.f32.mrb[26].mxu1 }
 0x37a   : > { %v3069_v9 = vadd.f32 %v3068_v5, %v2954_v7  ;;  %v2956_v10 = vpop.f32.mrb[25].mxu0  ;;  %v3072_v11 = vpop.f32.mrb[27].mxu1 }
 0x37b   : > { %v2957_v12 = vpop.f32.mrb[26].mxu0  ;;  %v3332_v10 = vsub.s32 2, %v5982_v49  ;;  %v3336_v11 = vsub.s32 3, %v5982_v49 }
 0x37c   : > { %v2958_v13 = vpop.f32.mrb[27].mxu0 }
 0x37d   : > { %v3333_v12 = vrot.slane %v3240_v1, %v3332_v10  ;;  %v3337_v50 = vrot.slane %v3240_v1, %v3336_v11 }
 0x3a9   : > { %v3213_v14 = vpop.f32.mrb[28].mxu0 }
 0x3aa   : > { %v3219_v16 = vadd.f32 %v3213_v14, %v3069_v9  ;;  %v3215_v17 = vpop.f32.mrb[29].mxu0 }
 0x3ab   : > { %v3216_v18 = vpop.f32.mrb[30].mxu0 }
 0x3ac   : > { %v3221_v19 = vadd.f32 %v3220_v15, %v3219_v16  ;;  %v3217_v20 = vpop.f32.mrb[31].mxu0 }
 0x3ae   : > { %v3222_v21 = vmax.f32 %v3221_v19, 0.0 }
 0x3b0   : > { %v3223_v23 = vpack.c.bf16 %v3222_v21, %v3222_v21 }
 0x3b2   : > { %4469 = vmatmul.mubr.msk.bf16.vlgmr.msra.gmra.mrb[28].mxu1 %vm2916_vm4, %v3223_v23 }
 0x3b3   : > { %3387 = vmatpush1.bf16.msra.mxu1 %v5063_v22  ;;  %3418 = vmatprep.mubr.bf16.mxu1 %v5171_v46  ;;  %v5072_v46 = vld [vmem:[%s6583_s7 + $0x68] ss:$16 sps:$4 sm:$0xff]  }
 0x3b4   : > { %3388 = vmatprep.subr.bf16.mxu1 %v5068_v24 }
 0x3b7   : > { %3389 = vmatpush1.bf16.msra.mxu1 %v5066_v25 }
 0x3b8   : > { %3390 = vmatprep.subr.bf16.mxu1 %v5071_v26  ;;  %v3499_v26 = vld [vmem:[%s6586_s10] sm:$0x1] }
 0x3bb   : > { %3391 = vmatpush1.bf16.msra.mxu1 %v5069_v27 }
 0x3bc   : > { %3392 = vmatprep.subr.bf16.mxu1 %v5074_v28 }
 0x3bf   : > { %3393 = vmatpush1.bf16.msra.mxu1 %v5072_v46 }
 0x3c0   : > { %4507 = vmatprep.subr.bf16.mxu1 %v5075_v31 }
 0x3c2   : > { %4470 = vmatmul.mubr.msk.bf16.vlgmr.msra.gmra.mrb[32].mxu1 %vm2916_vm4, %v3223_v23 }
 0x3c3   : > { %4508 = vmatpush3.bf16.msra.mxu1 %v5076_v32 }
 0x3c4   : > { %4509 = vmatprep.subr.bf16.mxu1 %v5077_v33 }
 0x3c7   : > { %4510 = vmatpush3.bf16.msra.mxu1 %v5078_v34 }
 0x3c8   : > { %4511 = vmatprep.subr.bf16.mxu1 %v5079_v35 }
 0x3cb   : > { %4512 = vmatpush3.bf16.msra.mxu1 %v5080_v36 }
 0x3cc   : > { %4513 = vmatprep.subr.bf16.mxu1 %v5081_v37 }
 0x3cf   : > { %4514 = vmatpush3.bf16.msra.mxu1 %v5082_v38 }
 0x3d0   : > { %4515 = vmatprep.subr.bf16.mxu1 %v5084_v40 }
 0x3d3   : > { %4516 = vmatpush3.bf16.msra.mxu1 %v5086_v41 }
 0x3d4   : > { %4517 = vmatprep.subr.bf16.mxu1 %v5088_v42 }
 0x3d7   : > { %4518 = vmatpush3.bf16.msra.mxu1 %v5090_v43 }
 0x3d8   : > { %4519 = vmatprep.subr.bf16.mxu1 %v5092_v45 }
 0x3db   : > { %4520 = vmatpush3.bf16.msra.mxu1 %v5094_v47 }
 0x3dc   : > { %4521 = vmatprep.subr.bf16.mxu1 %v5096_v51 }
 0x3df   : > { %4522 = vmatpush3.bf16.msra.mxu1 %v5098_v54 }
 0x485   : > { %v3379_v61 = vpop.f32.mrb[28].mxu1 }
 0x486   : > { %v3380_v29 = vadd.f32 %v3379_v61, %v3325_v2  ;;  %v3381_v30 = vpop.f32.mrb[29].mxu1 }
 0x487   : > { %v3382_v3 = vadd.f32 %v3381_v30, %v3329_v60  ;;  %v3383_v4 = vpop.f32.mrb[30].mxu1 }
 0x488   : > { %v3427_v5 = vmax.f32 %v3380_v29, 0.0  ;;  %v3384_v6 = vpop.f32.mrb[31].mxu1 }
 0x489   : > { %v3428_v7 = vmax.f32 %v3382_v3, 0.0 }
 0x48a   : > { %v3431_v9 = vpack.c.bf16 %v3427_v5, %v3427_v5 }
 0x48b   : > { %v3432_v8 = vpack.c.bf16 %v3428_v7, %v3428_v7 }
 0x48d   : > { %3724 = vmatprep.mubr.bf16.mxu1 %v3432_v8 }
 0x48e   : > { %3725 = vmatmul.mubr.bf16.vlgmr.msra.gmra.mrb[36].mxu1 %v3431_v9 }
 0x495   : > { %v3420_v13 = vpop.f32.mrb[32].mxu1 }
 0x496   : > { %v3421_v52 = vadd.f32 %v3420_v13, %v3333_v12  ;;  %v3422_v14 = vpop.f32.mrb[33].mxu1 }
 0x497   : > { %v3423_v15 = vadd.f32 %v3422_v14, %v3337_v50  ;;  %v3424_v16 = vpop.f32.mrb[34].mxu1 }
 0x498   : > { %v3429_v17 = vmax.f32 %v3421_v52, 0.0  ;;  %v3425_v18 = vpop.f32.mrb[35].mxu1 }
 0x499   : > { %v3430_v19 = vmax.f32 %v3423_v15, 0.0 }
 0x49a   : > { %v3433_v21 = vpack.c.bf16 %v3429_v17, %v3429_v17 }
 0x49b   : > { %v3434_v20 = vpack.c.bf16 %v3430_v19, %v3430_v19 }
 0x49d   : > { %3764 = vmatprep.mubr.bf16.mxu0 %v3434_v20 }
 0x49e   : > { %3765 = vmatmul.mubr.bf16.vlgmr.msra.gmra.mrb[32].mxu0 %v3433_v21 }
 0x561   : > { %v4523_v22 = vpop.f32.mrb[36].mxu1 }
 0x562   : > { %v4524_v23 = vpop.f32.mrb[37].mxu1 }
 0x563   : > { %v4525_v24 = vadd.f32 %v4524_v23, %v4523_v22  ;;  %v4526_v49 = vpop.f32.mrb[38].mxu1 }
 0x564   : > { %v4527_v25 = vpop.f32.mrb[39].mxu1 }
 0x565   : > { %v3727_v46 = vadd.f32 %v4525_v24, %v3499_v26 }
 0x571   : > { %v4545_v27 = vpop.f32.mrb[32].mxu0 }
 0x572   : > { %v4546_v28 = vpop.f32.mrb[33].mxu0 }
 0x573   : > { %v4547_v31 = vadd.f32 %v4546_v28, %v4545_v27  ;;  %v4548_v32 = vpop.f32.mrb[34].mxu0 }
 0x574   : > { %v4549_v33 = vpop.f32.mrb[35].mxu0 }
 0x575   : > { %v3767_v34 = vadd.f32 %v4547_v31, %v3727_v46 }
 0x577   : > { %3773 = vst.msk [vmem:[%s378_s26] sm:$0x1] %vm3772_vm5, %v3767_v34 }
 0x578   : > { %5120 = shalt.err (!%p5117_p3)
}
 0x579   : > { %s5121_s12 = scalar_lea.hbm %s6534_s15, 16  ;;  %s5125_s26 = scalar_lea.hbm %s6587_s11, 32 }
 0x57a   : > { %p5122_p4 = scmp.ne.s32.totalorder %s6534_s15, %s5121_s12  ;;  %p5126_p9 = scmp.lt.u32.totalorder %s6534_s15, %s6587_s11 }
 0x57b   : > { %p5127_p10 = scmp.lt.u32.totalorder %s5125_s26, %s5121_s12  ;;  %p5129_p12 = scmp.lt.u32.totalorder %s5121_s12, %s6534_s15 }
 0x57c   : > { %p5123_p7 = pnand %p5122_p4, %p5271_p5 }
 0x57d   : > { %p5128_p11 = por %p5127_p10, %p5126_p9 }
 0x57e   : > { %p5124_p8 = pneg %p5123_p7 }
 0x57f   : > { %p5130_p13 = por %p5129_p12, %p5128_p11 }
 0x581   : > { %p5131_p0 = pnand %p5130_p13, %p5124_p8 }
 0x583   : > { %5134 = shalt.err (!%p5131_p0)
}
 0x584   : > { %4551 = dma.vmem_to_hbm [thread:$0]  (%p5271_p5), %s6536_s24, 16, %s6534_s15, %s3775_s21  }
 0x585 PF: > { %p4557_p1 = scmp.ge.s32.totalorder %s5169_s20, 2  ;;  %s3799_s19 = sand.u32 1, %s5157_s17  }
 0x586   : > { %s3800_s14 = scalar_lea.sflag [#allocation3], %s3799_s19 }
 0x587   : > { %p4554_p2 = pnand %p4557_p1, %p5275_p6 }
 0x589   : > { %5152 = dma.done.wait (!%p4554_p2), %s3800_s14, 16  }
 0x58a   : > { %5154 = vsyncadd (!%p4554_p2), %s3800_s14, 4294967280  ;;  %s6595_s30 = sld [smem:[#allocation5_spill]]  ;;  %s6596_s19 = sld [smem:[#allocation6_spill]] }
 0x58b   : > { %p21_p3 = scmp.ge.s32.totalorder %s5258_s23, 4   ;;  %s6597_s17 = smov %s5161_s18 }
 0x58c   : > { %s6599_s20 = smov %s5258_s23 }
 0x58d   :  { %23 = sbr.rel (!%p21_p3) target bundleno = 3 (0x3), region = 111 }
 0x590   : > { %s6598_s18 = smov %s6595_s30 }
 0x594   :  { %3804 = vsyncpa [#allocation3], 1 }
 0x595   :  { %3806 = vsyncpa [#allocation3 + $0x1], 1 }

</bundles_post_ra>
